<compile_context>
chip_gen: v5e
topology: v5e:2x2
jax: 0.10.0
libtpu: 0.0.40
codegen_flags: <defaults>
</compile_context>

<pallas_src>
import functools

import jax
import jax.numpy as jnp
from jax.experimental import pallas as pl
from jax.experimental.pallas import tpu as pltpu

SUBLANE = 8
LANE = 128


def _round_up(x, m):
    return (x + m - 1) // m * m


# ----------------------------------------------------------------------------
# Fused kernel: in-kernel embedding (one-hot matmul) -> batched input projection
# -> unrolled LSTM recurrence with last-output latch -> Linear/ReLU/Linear head.
# Single invocation, no grid.
# ----------------------------------------------------------------------------
def ques_kernel(ids_ref, len_ref, emb_ref, wih_ref, whh_ref, b_ref,
                w1_ref, b1_ref, w2_ref, b2_ref,
                out_ref, gx_sc, *, seq_len, batch_pad, hidden_pad, vocab_pad):
    T, B, HP, VP = seq_len, batch_pad, hidden_pad, vocab_pad
    wdt = whh_ref.dtype                                   # bf16 matmul operands

    # Phase 0+1: fused embedding lookup (one-hot MXU matmul) + input projection
    # for ALL timesteps, written once to a VMEM scratch (keeps it out of vregs).
    iota = jax.lax.broadcasted_iota(jnp.int32, (T * B, VP), 1)
    onehot = (iota == ids_ref[...]).astype(wdt)           # (T*B, VP) exact 0/1
    x = jnp.dot(onehot, emb_ref[...],
                preferred_element_type=jnp.float32)       # (T*B, EP)
    gx_sc[...] = (jnp.dot(x.astype(wdt), wih_ref[...],
                          preferred_element_type=jnp.float32)
                  + b_ref[...])                           # (T*B, 4*HP) f32

    # Hoisted lane-broadcast of lengths (JAX does not CSE broadcast_in_dim).
    lens_b = jnp.broadcast_to(len_ref[...], (B, HP))      # (B, HP) int32

    h0 = jnp.zeros((B, HP), jnp.float32)
    c0 = jnp.zeros((B, HP), jnp.float32)
    last0 = jnp.zeros((B, HP), jnp.float32)

    # Phase 2: serial time recurrence.  fori_loop(unroll=True) keeps the fully
    # unrolled schedule while bounding live ranges for the LLO scheduler.
    def step(t, carry):
        h, c, last = carry
        row0 = pl.multiple_of(t * B, SUBLANE)
        # NOTE: whh_ref is read at the matmul site (do NOT hoist the (HP,4HP)
        # weight into a value — it is the whole vreg file); Mosaic streams it.
        gates = (gx_sc[pl.ds(row0, B), :]
                 + jnp.dot(h.astype(wdt), whh_ref[...],
                           preferred_element_type=jnp.float32))
        # PyTorch gate order i, f, g, o; each gate occupies a 128-aligned block.
        i_g = jax.nn.sigmoid(gates[:, 0 * HP:1 * HP])
        f_g = jax.nn.sigmoid(gates[:, 1 * HP:2 * HP])
        g_g = jnp.tanh(gates[:, 2 * HP:3 * HP])
        o_g = jax.nn.sigmoid(gates[:, 3 * HP:4 * HP])
        c = f_g * c + i_g * g_g
        h = o_g * jnp.tanh(c)
        # Latch output of the last valid timestep (t == len - 1) per row.
        last = jnp.where(lens_b == t + 1, h, last)
        return h, c, last

    _, _, last = jax.lax.fori_loop(0, T, step, (h0, c0, last0), unroll=True)

    # Phase 3: fused MLP head (dropout is identity in eval mode).
    h1 = jnp.maximum(
        jnp.dot(last.astype(wdt), w1_ref[...],
                preferred_element_type=jnp.float32) + b1_ref[...], 0.0)
    out_ref[...] = (jnp.dot(h1.astype(wdt), w2_ref[...],
                            preferred_element_type=jnp.float32) + b2_ref[...])


# ----------------------------------------------------------------------------
# Parameter packing: PyTorch-layout weights -> lane-aligned, zero-padded,
# bf16-matmul layout.  Biases stay f32 (added on the f32 accumulation path).
# ----------------------------------------------------------------------------
def init_logical_params(key, n_vocab, n_class, embed_hidden, lstm_hidden,
                        mlp_hidden):
    ks = jax.random.split(key, 9)
    s = 0.1
    return dict(
        embed=jax.random.normal(ks[0], (n_vocab, embed_hidden), jnp.float32) * s,
        w_ih=jax.random.normal(ks[1], (4 * lstm_hidden, embed_hidden), jnp.float32) * s,
        w_hh=jax.random.normal(ks[2], (4 * lstm_hidden, lstm_hidden), jnp.float32) * s,
        b_ih=jax.random.normal(ks[3], (4 * lstm_hidden,), jnp.float32) * s,
        b_hh=jax.random.normal(ks[4], (4 * lstm_hidden,), jnp.float32) * s,
        w1=jax.random.normal(ks[5], (mlp_hidden, lstm_hidden), jnp.float32) * s,
        b1=jax.random.normal(ks[6], (mlp_hidden,), jnp.float32) * s,
        w2=jax.random.normal(ks[7], (n_class, mlp_hidden), jnp.float32) * s,
        b2=jax.random.normal(ks[8], (n_class,), jnp.float32) * s,
    )


def pack_kernel_params(p, n_vocab, n_class, embed_hidden, lstm_hidden,
                       mlp_hidden, weight_dtype=jnp.bfloat16):
    H, E = lstm_hidden, embed_hidden
    HP = _round_up(H, LANE)
    EP = _round_up(E, LANE)
    MP = _round_up(mlp_hidden, LANE)
    CP = _round_up(n_class, LANE)
    VP = _round_up(n_vocab, LANE)

    def pad_gate_cols(w_t):  # (rows, 4H) -> (rows, 4HP); each gate 128-aligned
        rows = w_t.shape[0]
        out = jnp.zeros((rows, 4 * HP), jnp.float32)
        for g in range(4):
            out = out.at[:, g * HP:g * HP + H].set(w_t[:, g * H:(g + 1) * H])
        return out

    embed_p = jnp.zeros((VP, EP), jnp.float32).at[:n_vocab, :E].set(p["embed"])
    w_ih_t = jnp.zeros((EP, 4 * HP), jnp.float32).at[:E, :].set(
        pad_gate_cols(p["w_ih"].T))                                   # (EP, 4HP)
    w_hh_t = jnp.zeros((HP, 4 * HP), jnp.float32).at[:H, :].set(
        pad_gate_cols(p["w_hh"].T))                                   # (HP, 4HP)
    b_lstm = pad_gate_cols((p["b_ih"] + p["b_hh"])[None, :])          # (1, 4HP) f32

    w1_t = jnp.zeros((HP, MP), jnp.float32).at[:H, :mlp_hidden].set(p["w1"].T)
    b1 = jnp.zeros((1, MP), jnp.float32).at[0, :mlp_hidden].set(p["b1"])
    w2_t = jnp.zeros((MP, CP), jnp.float32).at[:mlp_hidden, :n_class].set(p["w2"].T)
    b2 = jnp.zeros((1, CP), jnp.float32).at[0, :n_class].set(p["b2"])

    wd = weight_dtype
    return dict(embed_p=embed_p.astype(wd), w_ih_t=w_ih_t.astype(wd),
                w_hh_t=w_hh_t.astype(wd), b_lstm=b_lstm,
                w1_t=w1_t.astype(wd), b1=b1, w2_t=w2_t.astype(wd), b2=b2)


# ----------------------------------------------------------------------------
# Forward wrapper: tiny int32 id/length padding (no activation slab through HBM)
# + single fused pallas_call.
# ----------------------------------------------------------------------------
@functools.partial(jax.jit, static_argnames=("n_class",))
def ques_forward(kp, question, question_len, *, n_class):
    # Precondition (documented, matches pack_padded_sequence): 1 <= len <= T.
    B, T = question.shape
    VP, EP = kp["embed_p"].shape
    HP = kp["w_hh_t"].shape[0]
    MP = kp["w1_t"].shape[1]
    CP = kp["w2_t"].shape[1]
    BP = _round_up(B, SUBLANE)

    # Time-major padded token ids (256 B of int32) and lengths.  Padded batch
    # rows use token 0 / length 1 and are sliced off afterwards.
    q_pad = jnp.zeros((BP, T), jnp.int32).at[:B].set(question.astype(jnp.int32))
    ids_tm = q_pad.T.reshape(T * BP, 1)                              # (T*BP, 1)
    lens = jnp.ones((BP, 1), jnp.int32).at[:B, 0].set(
        question_len.astype(jnp.int32))

    args = (ids_tm, lens, kp["embed_p"], kp["w_ih_t"], kp["w_hh_t"],
            kp["b_lstm"], kp["w1_t"], kp["b1"], kp["w2_t"], kp["b2"])

    flops = 2 * (T * BP * VP * EP            # one-hot embedding matmul
                 + T * BP * EP * 4 * HP      # input projection
                 + T * BP * HP * 4 * HP      # recurrent projection
                 + BP * HP * MP + BP * MP * CP)  # MLP head
    transcendentals = 5 * T * BP * HP        # 3 sigmoid + 2 tanh per elem/step
    bytes_accessed = (sum(a.size * a.dtype.itemsize for a in args)
                      + BP * CP * 4)

    kernel = functools.partial(ques_kernel, seq_len=T, batch_pad=BP,
                               hidden_pad=HP, vocab_pad=VP)
    out = pl.pallas_call(
        kernel,
        out_shape=jax.ShapeDtypeStruct((BP, CP), jnp.float32),
        in_specs=[pl.BlockSpec(memory_space=pltpu.MemorySpace.VMEM)] * len(args),
        out_specs=pl.BlockSpec(memory_space=pltpu.MemorySpace.VMEM),
        scratch_shapes=[pltpu.VMEM((T * BP, 4 * HP), jnp.float32)],
        cost_estimate=pl.CostEstimate(flops=flops,
                                      transcendentals=transcendentals,
                                      bytes_accessed=bytes_accessed),
    )(*args)

    return out[:B, :n_class]


# ----------------------------------------------------------------------------
# Pure-JAX reference (mirrors the PyTorch module semantics) for validation.
# ----------------------------------------------------------------------------
def ques_reference(p, question, question_len):
    H = p["w_hh"].shape[1]
    emb = p["embed"][question]                           # (B, T, E)
    B, T, _ = emb.shape
    h = jnp.zeros((B, H), jnp.float32)
    c = jnp.zeros((B, H), jnp.float32)
    last = jnp.zeros((B, H), jnp.float32)
    for t in range(T):
        g = (emb[:, t, :] @ p["w_ih"].T + h @ p["w_hh"].T
             + p["b_ih"] + p["b_hh"])
        i_g = jax.nn.sigmoid(g[:, 0 * H:1 * H])
        f_g = jax.nn.sigmoid(g[:, 1 * H:2 * H])
        g_g = jnp.tanh(g[:, 2 * H:3 * H])
        o_g = jax.nn.sigmoid(g[:, 3 * H:4 * H])
        c = f_g * c + i_g * g_g
        h = o_g * jnp.tanh(c)
        last = jnp.where((question_len == t + 1)[:, None], h, last)
    h1 = jnp.maximum(last @ p["w1"].T + p["b1"], 0.0)
    return h1 @ p["w2"].T + p["b2"]


def quantize_weights(p, dtype):
    """Round matmul weights to `dtype` (biases stay f32) — mirrors the kernel's
    intentional bf16 weight storage so kernel correctness can be checked tightly."""
    q = dict(p)
    for k in ("embed", "w_ih", "w_hh", "w1", "w2"):
        q[k] = p[k].astype(dtype).astype(jnp.float32)
    return q


if __name__ == "__main__":
    # Small shapes consistent with the module.
    B, T = 2, 8
    n_vocab, n_class = 50, 8
    embed_hidden, lstm_hidden, mlp_hidden = 32, 64, 64

    key = jax.random.PRNGKey(0)
    kp_key, kq_key = jax.random.split(key)
    logical = init_logical_params(kp_key, n_vocab, n_class, embed_hidden,
                                  lstm_hidden, mlp_hidden)
    kparams = pack_kernel_params(logical, n_vocab, n_class, embed_hidden,
                                 lstm_hidden, mlp_hidden,
                                 weight_dtype=jnp.bfloat16)

    question = jax.random.randint(kq_key, (B, T), 0, n_vocab, dtype=jnp.int32)
    # pack_padded_sequence default requires descending lengths, each in [1, T].
    question_len = jnp.array([8, 5], dtype=jnp.int32)

    logits = ques_forward(kparams, question, question_len, n_class=n_class)
    jax.block_until_ready(logits)
    assert logits.shape == (B, n_class)

    # Tight check vs. a reference using the SAME bf16-rounded weights: isolates
    # kernel/packing/latch correctness from the intentional bf16 quantization.
    ref_bf16w = ques_reference(quantize_weights(logical, jnp.bfloat16),
                               question, question_len)
    assert jnp.allclose(logits, ref_bf16w, atol=5e-3, rtol=5e-3), (
        float(jnp.max(jnp.abs(logits - ref_bf16w))))

    # Loose check vs. the full-f32 PyTorch-semantics reference: bounds the total
    # bf16 weight-quantization error.
    ref_f32 = ques_reference(logical, question, question_len)
    assert jnp.allclose(logits, ref_f32, atol=3e-2, rtol=3e-2), (
        float(jnp.max(jnp.abs(logits - ref_f32))))

    print("KERNEL_OK")
</pallas_src>

<mosaic_0001>
module attributes {stable_mosaic.version = 11 : i64} {
  func.func @ques_kernel(%arg0: memref<64x1xi32, #tpu.memory_space<vmem>>, %arg1: memref<8x1xi32, #tpu.memory_space<vmem>>, %arg2: memref<128x128xbf16, #tpu.memory_space<vmem>>, %arg3: memref<128x512xbf16, #tpu.memory_space<vmem>>, %arg4: memref<128x512xbf16, #tpu.memory_space<vmem>>, %arg5: memref<1x512xf32, #tpu.memory_space<vmem>>, %arg6: memref<128x128xbf16, #tpu.memory_space<vmem>>, %arg7: memref<1x128xf32, #tpu.memory_space<vmem>>, %arg8: memref<128x128xbf16, #tpu.memory_space<vmem>>, %arg9: memref<1x128xf32, #tpu.memory_space<vmem>>, %arg10: memref<8x128xf32, #tpu.memory_space<vmem>>, %arg11: memref<64x512xf32, #tpu.memory_space<vmem>>) attributes {dimension_semantics = [], scalar_prefetch = 0 : i64, scratch_operands = 1 : i64, tpu.core_type = #tpu.core_type<tc>} {
    %0 = tpu.iota {dimensions = array<i32: 1>} : vector<64x128xi32>
    %c0 = arith.constant 0 : index
    %c0_0 = arith.constant 0 : index
    %1 = vector.load %arg0[%c0, %c0_0] : memref<64x1xi32, #tpu.memory_space<vmem>>, vector<64x1xi32>
    %2 = vector.broadcast %1 : vector<64x1xi32> to vector<64x128xi32>
    %3 = arith.cmpi eq, %0, %2 : vector<64x128xi32>
    %4 = arith.extui %3 : vector<64x128xi1> to vector<64x128xi32>
    %5 = arith.sitofp %4 : vector<64x128xi32> to vector<64x128xf32>
    %6 = arith.truncf %5 : vector<64x128xf32> to vector<64x128xbf16>
    %c0_1 = arith.constant 0 : index
    %c0_2 = arith.constant 0 : index
    %7 = vector.load %arg2[%c0_1, %c0_2] : memref<128x128xbf16, #tpu.memory_space<vmem>>, vector<128x128xbf16>
    %cst = arith.constant dense<0.000000e+00> : vector<64x128xf32>
    %8 = tpu.matmul %6, %7, %cst {dimension_numbers = #tpu.dot_dimension_numbers<[1], [0], [0], [1], [0, 0, 1, 1], [], []>} : vector<64x128xbf16>, vector<128x128xbf16>, vector<64x128xf32> -> vector<64x128xf32>
    %9 = arith.truncf %8 : vector<64x128xf32> to vector<64x128xbf16>
    %c0_3 = arith.constant 0 : index
    %c0_4 = arith.constant 0 : index
    %10 = vector.load %arg3[%c0_3, %c0_4] : memref<128x512xbf16, #tpu.memory_space<vmem>>, vector<128x512xbf16>
    %cst_5 = arith.constant dense<0.000000e+00> : vector<64x512xf32>
    %11 = tpu.matmul %9, %10, %cst_5 {dimension_numbers = #tpu.dot_dimension_numbers<[1], [0], [0], [1], [0, 0, 1, 1], [], []>} : vector<64x128xbf16>, vector<128x512xbf16>, vector<64x512xf32> -> vector<64x512xf32>
    %c0_6 = arith.constant 0 : index
    %c0_7 = arith.constant 0 : index
    %12 = vector.load %arg5[%c0_6, %c0_7] : memref<1x512xf32, #tpu.memory_space<vmem>>, vector<1x512xf32>
    %13 = vector.broadcast %12 : vector<1x512xf32> to vector<64x512xf32>
    %14 = arith.addf %11, %13 : vector<64x512xf32>
    %c0_8 = arith.constant 0 : index
    %c0_9 = arith.constant 0 : index
    %15 = vector.load %arg11[%c0_8, %c0_9] : memref<64x512xf32, #tpu.memory_space<vmem>>, vector<64x512xf32>
    tpu.vector_store %arg11[%c0_8, %c0_9], %14 {strides = array<i32>} : memref<64x512xf32, #tpu.memory_space<vmem>>, vector<64x512xf32>,
    %c0_10 = arith.constant 0 : index
    %c0_11 = arith.constant 0 : index
    %16 = vector.load %arg1[%c0_10, %c0_11] : memref<8x1xi32, #tpu.memory_space<vmem>>, vector<8x1xi32>
    %17 = vector.shape_cast %16 : vector<8x1xi32> to vector<8x1xi32>
    %18 = vector.broadcast %17 : vector<8x1xi32> to vector<8x128xi32>
    %cst_12 = arith.constant 0.000000e+00 : f32
    %19 = vector.broadcast %cst_12 : f32 to vector<8x128xf32>
    %cst_13 = arith.constant 0.000000e+00 : f32
    %20 = vector.broadcast %cst_13 : f32 to vector<8x128xf32>
    %cst_14 = arith.constant 0.000000e+00 : f32
    %21 = vector.broadcast %cst_14 : f32 to vector<8x128xf32>
    %c0_i32 = arith.constant 0 : i32
    %c8_i32 = arith.constant 8 : i32
    %22 = arith.muli %c0_i32, %c8_i32 : i32
    %23 = tpu.assume_multiple %22, 8 : i32
    %24 = arith.index_cast %23 : i32 to index
    %c0_15 = arith.constant 0 : index
    %25 = vector.load %arg11[%24, %c0_15] : memref<64x512xf32, #tpu.memory_space<vmem>>, vector<8x512xf32>
    %26 = arith.truncf %19 : vector<8x128xf32> to vector<8x128xbf16>
    %c0_16 = arith.constant 0 : index
    %c0_17 = arith.constant 0 : index
    %27 = vector.load %arg4[%c0_16, %c0_17] : memref<128x512xbf16, #tpu.memory_space<vmem>>, vector<128x512xbf16>
    %cst_18 = arith.constant dense<0.000000e+00> : vector<8x512xf32>
    %28 = tpu.matmul %26, %27, %cst_18 {dimension_numbers = #tpu.dot_dimension_numbers<[1], [0], [0], [1], [0, 0, 1, 1], [], []>} : vector<8x128xbf16>, vector<128x512xbf16>, vector<8x512xf32> -> vector<8x512xf32>
    %29 = arith.addf %25, %28 : vector<8x512xf32>
    %30 = vector.extract_strided_slice %29 {offsets = [0, 0], sizes = [8, 128], strides = [1, 1]} : vector<8x512xf32> to vector<8x128xf32>
    %31 = arith.negf %30 : vector<8x128xf32>
    %32 = math.exp %31 : vector<8x128xf32>
    %cst_19 = arith.constant 1.000000e+00 : f32
    %33 = vector.broadcast %cst_19 : f32 to vector<8x128xf32>
    %34 = arith.addf %33, %32 : vector<8x128xf32>
    %35 = arith.divf %33, %34 : vector<8x128xf32>
    %36 = vector.extract_strided_slice %29 {offsets = [0, 128], sizes = [8, 128], strides = [1, 1]} : vector<8x512xf32> to vector<8x128xf32>
    %37 = arith.negf %36 : vector<8x128xf32>
    %38 = math.exp %37 : vector<8x128xf32>
    %cst_20 = arith.constant 1.000000e+00 : f32
    %39 = vector.broadcast %cst_20 : f32 to vector<8x128xf32>
    %40 = arith.addf %39, %38 : vector<8x128xf32>
    %41 = arith.divf %39, %40 : vector<8x128xf32>
    %42 = vector.extract_strided_slice %29 {offsets = [0, 256], sizes = [8, 128], strides = [1, 1]} : vector<8x512xf32> to vector<8x128xf32>
    %43 = math.tanh %42 : vector<8x128xf32>
    %44 = vector.extract_strided_slice %29 {offsets = [0, 384], sizes = [8, 128], strides = [1, 1]} : vector<8x512xf32> to vector<8x128xf32>
    %45 = arith.negf %44 : vector<8x128xf32>
    %46 = math.exp %45 : vector<8x128xf32>
    %cst_21 = arith.constant 1.000000e+00 : f32
    %47 = vector.broadcast %cst_21 : f32 to vector<8x128xf32>
    %48 = arith.addf %47, %46 : vector<8x128xf32>
    %49 = arith.divf %47, %48 : vector<8x128xf32>
    %50 = arith.mulf %41, %20 : vector<8x128xf32>
    %51 = arith.mulf %35, %43 : vector<8x128xf32>
    %52 = arith.addf %50, %51 : vector<8x128xf32>
    %53 = math.tanh %52 : vector<8x128xf32>
    %54 = arith.mulf %49, %53 : vector<8x128xf32>
    %c1_i32 = arith.constant 1 : i32
    %55 = arith.addi %c0_i32, %c1_i32 : i32
    %56 = vector.broadcast %55 : i32 to vector<8x128xi32>
    %57 = arith.cmpi eq, %18, %56 : vector<8x128xi32>
    %58 = arith.select %57, %54, %21 : vector<8x128xi1>, vector<8x128xf32>
    %c1_i32_22 = arith.constant 1 : i32
    %c8_i32_23 = arith.constant 8 : i32
    %59 = arith.muli %c1_i32_22, %c8_i32_23 : i32
    %60 = tpu.assume_multiple %59, 8 : i32
    %61 = arith.index_cast %60 : i32 to index
    %c0_24 = arith.constant 0 : index
    %62 = vector.load %arg11[%61, %c0_24] : memref<64x512xf32, #tpu.memory_space<vmem>>, vector<8x512xf32>
    %63 = arith.truncf %54 : vector<8x128xf32> to vector<8x128xbf16>
    %c0_25 = arith.constant 0 : index
    %c0_26 = arith.constant 0 : index
    %64 = vector.load %arg4[%c0_25, %c0_26] : memref<128x512xbf16, #tpu.memory_space<vmem>>, vector<128x512xbf16>
    %cst_27 = arith.constant dense<0.000000e+00> : vector<8x512xf32>
    %65 = tpu.matmul %63, %64, %cst_27 {dimension_numbers = #tpu.dot_dimension_numbers<[1], [0], [0], [1], [0, 0, 1, 1], [], []>} : vector<8x128xbf16>, vector<128x512xbf16>, vector<8x512xf32> -> vector<8x512xf32>
    %66 = arith.addf %62, %65 : vector<8x512xf32>
    %67 = vector.extract_strided_slice %66 {offsets = [0, 0], sizes = [8, 128], strides = [1, 1]} : vector<8x512xf32> to vector<8x128xf32>
    %68 = arith.negf %67 : vector<8x128xf32>
    %69 = math.exp %68 : vector<8x128xf32>
    %cst_28 = arith.constant 1.000000e+00 : f32
    %70 = vector.broadcast %cst_28 : f32 to vector<8x128xf32>
    %71 = arith.addf %70, %69 : vector<8x128xf32>
    %72 = arith.divf %70, %71 : vector<8x128xf32>
    %73 = vector.extract_strided_slice %66 {offsets = [0, 128], sizes = [8, 128], strides = [1, 1]} : vector<8x512xf32> to vector<8x128xf32>
    %74 = arith.negf %73 : vector<8x128xf32>
    %75 = math.exp %74 : vector<8x128xf32>
    %cst_29 = arith.constant 1.000000e+00 : f32
    %76 = vector.broadcast %cst_29 : f32 to vector<8x128xf32>
    %77 = arith.addf %76, %75 : vector<8x128xf32>
    %78 = arith.divf %76, %77 : vector<8x128xf32>
    %79 = vector.extract_strided_slice %66 {offsets = [0, 256], sizes = [8, 128], strides = [1, 1]} : vector<8x512xf32> to vector<8x128xf32>
    %80 = math.tanh %79 : vector<8x128xf32>
    %81 = vector.extract_strided_slice %66 {offsets = [0, 384], sizes = [8, 128], strides = [1, 1]} : vector<8x512xf32> to vector<8x128xf32>
    %82 = arith.negf %81 : vector<8x128xf32>
    %83 = math.exp %82 : vector<8x128xf32>
    %cst_30 = arith.constant 1.000000e+00 : f32
    %84 = vector.broadcast %cst_30 : f32 to vector<8x128xf32>
    %85 = arith.addf %84, %83 : vector<8x128xf32>
    %86 = arith.divf %84, %85 : vector<8x128xf32>
    %87 = arith.mulf %78, %52 : vector<8x128xf32>
    %88 = arith.mulf %72, %80 : vector<8x128xf32>
    %89 = arith.addf %87, %88 : vector<8x128xf32>
    %90 = math.tanh %89 : vector<8x128xf32>
    %91 = arith.mulf %86, %90 : vector<8x128xf32>
    %c1_i32_31 = arith.constant 1 : i32
    %92 = arith.addi %c1_i32_22, %c1_i32_31 : i32
    %93 = vector.broadcast %92 : i32 to vector<8x128xi32>
    %94 = arith.cmpi eq, %18, %93 : vector<8x128xi32>
    %95 = arith.select %94, %91, %58 : vector<8x128xi1>, vector<8x128xf32>
    %c2_i32 = arith.constant 2 : i32
    %c8_i32_32 = arith.constant 8 : i32
    %96 = arith.muli %c2_i32, %c8_i32_32 : i32
    %97 = tpu.assume_multiple %96, 8 : i32
    %98 = arith.index_cast %97 : i32 to index
    %c0_33 = arith.constant 0 : index
    %99 = vector.load %arg11[%98, %c0_33] : memref<64x512xf32, #tpu.memory_space<vmem>>, vector<8x512xf32>
    %100 = arith.truncf %91 : vector<8x128xf32> to vector<8x128xbf16>
    %c0_34 = arith.constant 0 : index
    %c0_35 = arith.constant 0 : index
    %101 = vector.load %arg4[%c0_34, %c0_35] : memref<128x512xbf16, #tpu.memory_space<vmem>>, vector<128x512xbf16>
    %cst_36 = arith.constant dense<0.000000e+00> : vector<8x512xf32>
    %102 = tpu.matmul %100, %101, %cst_36 {dimension_numbers = #tpu.dot_dimension_numbers<[1], [0], [0], [1], [0, 0, 1, 1], [], []>} : vector<8x128xbf16>, vector<128x512xbf16>, vector<8x512xf32> -> vector<8x512xf32>
    %103 = arith.addf %99, %102 : vector<8x512xf32>
    %104 = vector.extract_strided_slice %103 {offsets = [0, 0], sizes = [8, 128], strides = [1, 1]} : vector<8x512xf32> to vector<8x128xf32>
    %105 = arith.negf %104 : vector<8x128xf32>
    %106 = math.exp %105 : vector<8x128xf32>
    %cst_37 = arith.constant 1.000000e+00 : f32
    %107 = vector.broadcast %cst_37 : f32 to vector<8x128xf32>
    %108 = arith.addf %107, %106 : vector<8x128xf32>
    %109 = arith.divf %107, %108 : vector<8x128xf32>
    %110 = vector.extract_strided_slice %103 {offsets = [0, 128], sizes = [8, 128], strides = [1, 1]} : vector<8x512xf32> to vector<8x128xf32>
    %111 = arith.negf %110 : vector<8x128xf32>
    %112 = math.exp %111 : vector<8x128xf32>
    %cst_38 = arith.constant 1.000000e+00 : f32
    %113 = vector.broadcast %cst_38 : f32 to vector<8x128xf32>
    %114 = arith.addf %113, %112 : vector<8x128xf32>
    %115 = arith.divf %113, %114 : vector<8x128xf32>
    %116 = vector.extract_strided_slice %103 {offsets = [0, 256], sizes = [8, 128], strides = [1, 1]} : vector<8x512xf32> to vector<8x128xf32>
    %117 = math.tanh %116 : vector<8x128xf32>
    %118 = vector.extract_strided_slice %103 {offsets = [0, 384], sizes = [8, 128], strides = [1, 1]} : vector<8x512xf32> to vector<8x128xf32>
    %119 = arith.negf %118 : vector<8x128xf32>
    %120 = math.exp %119 : vector<8x128xf32>
    %cst_39 = arith.constant 1.000000e+00 : f32
    %121 = vector.broadcast %cst_39 : f32 to vector<8x128xf32>
    %122 = arith.addf %121, %120 : vector<8x128xf32>
    %123 = arith.divf %121, %122 : vector<8x128xf32>
    %124 = arith.mulf %115, %89 : vector<8x128xf32>
    %125 = arith.mulf %109, %117 : vector<8x128xf32>
    %126 = arith.addf %124, %125 : vector<8x128xf32>
    %127 = math.tanh %126 : vector<8x128xf32>
    %128 = arith.mulf %123, %127 : vector<8x128xf32>
    %c1_i32_40 = arith.constant 1 : i32
    %129 = arith.addi %c2_i32, %c1_i32_40 : i32
    %130 = vector.broadcast %129 : i32 to vector<8x128xi32>
    %131 = arith.cmpi eq, %18, %130 : vector<8x128xi32>
    %132 = arith.select %131, %128, %95 : vector<8x128xi1>, vector<8x128xf32>
    %c3_i32 = arith.constant 3 : i32
    %c8_i32_41 = arith.constant 8 : i32
    %133 = arith.muli %c3_i32, %c8_i32_41 : i32
    %134 = tpu.assume_multiple %133, 8 : i32
    %135 = arith.index_cast %134 : i32 to index
    %c0_42 = arith.constant 0 : index
    %136 = vector.load %arg11[%135, %c0_42] : memref<64x512xf32, #tpu.memory_space<vmem>>, vector<8x512xf32>
    %137 = arith.truncf %128 : vector<8x128xf32> to vector<8x128xbf16>
    %c0_43 = arith.constant 0 : index
    %c0_44 = arith.constant 0 : index
    %138 = vector.load %arg4[%c0_43, %c0_44] : memref<128x512xbf16, #tpu.memory_space<vmem>>, vector<128x512xbf16>
    %cst_45 = arith.constant dense<0.000000e+00> : vector<8x512xf32>
    %139 = tpu.matmul %137, %138, %cst_45 {dimension_numbers = #tpu.dot_dimension_numbers<[1], [0], [0], [1], [0, 0, 1, 1], [], []>} : vector<8x128xbf16>, vector<128x512xbf16>, vector<8x512xf32> -> vector<8x512xf32>
    %140 = arith.addf %136, %139 : vector<8x512xf32>
    %141 = vector.extract_strided_slice %140 {offsets = [0, 0], sizes = [8, 128], strides = [1, 1]} : vector<8x512xf32> to vector<8x128xf32>
    %142 = arith.negf %141 : vector<8x128xf32>
    %143 = math.exp %142 : vector<8x128xf32>
    %cst_46 = arith.constant 1.000000e+00 : f32
    %144 = vector.broadcast %cst_46 : f32 to vector<8x128xf32>
    %145 = arith.addf %144, %143 : vector<8x128xf32>
    %146 = arith.divf %144, %145 : vector<8x128xf32>
    %147 = vector.extract_strided_slice %140 {offsets = [0, 128], sizes = [8, 128], strides = [1, 1]} : vector<8x512xf32> to vector<8x128xf32>
    %148 = arith.negf %147 : vector<8x128xf32>
    %149 = math.exp %148 : vector<8x128xf32>
    %cst_47 = arith.constant 1.000000e+00 : f32
    %150 = vector.broadcast %cst_47 : f32 to vector<8x128xf32>
    %151 = arith.addf %150, %149 : vector<8x128xf32>
    %152 = arith.divf %150, %151 : vector<8x128xf32>
    %153 = vector.extract_strided_slice %140 {offsets = [0, 256], sizes = [8, 128], strides = [1, 1]} : vector<8x512xf32> to vector<8x128xf32>
    %154 = math.tanh %153 : vector<8x128xf32>
    %155 = vector.extract_strided_slice %140 {offsets = [0, 384], sizes = [8, 128], strides = [1, 1]} : vector<8x512xf32> to vector<8x128xf32>
    %156 = arith.negf %155 : vector<8x128xf32>
    %157 = math.exp %156 : vector<8x128xf32>
    %cst_48 = arith.constant 1.000000e+00 : f32
    %158 = vector.broadcast %cst_48 : f32 to vector<8x128xf32>
    %159 = arith.addf %158, %157 : vector<8x128xf32>
    %160 = arith.divf %158, %159 : vector<8x128xf32>
    %161 = arith.mulf %152, %126 : vector<8x128xf32>
    %162 = arith.mulf %146, %154 : vector<8x128xf32>
    %163 = arith.addf %161, %162 : vector<8x128xf32>
    %164 = math.tanh %163 : vector<8x128xf32>
    %165 = arith.mulf %160, %164 : vector<8x128xf32>
    %c1_i32_49 = arith.constant 1 : i32
    %166 = arith.addi %c3_i32, %c1_i32_49 : i32
    %167 = vector.broadcast %166 : i32 to vector<8x128xi32>
    %168 = arith.cmpi eq, %18, %167 : vector<8x128xi32>
    %169 = arith.select %168, %165, %132 : vector<8x128xi1>, vector<8x128xf32>
    %c4_i32 = arith.constant 4 : i32
    %c8_i32_50 = arith.constant 8 : i32
    %170 = arith.muli %c4_i32, %c8_i32_50 : i32
    %171 = tpu.assume_multiple %170, 8 : i32
    %172 = arith.index_cast %171 : i32 to index
    %c0_51 = arith.constant 0 : index
    %173 = vector.load %arg11[%172, %c0_51] : memref<64x512xf32, #tpu.memory_space<vmem>>, vector<8x512xf32>
    %174 = arith.truncf %165 : vector<8x128xf32> to vector<8x128xbf16>
    %c0_52 = arith.constant 0 : index
    %c0_53 = arith.constant 0 : index
    %175 = vector.load %arg4[%c0_52, %c0_53] : memref<128x512xbf16, #tpu.memory_space<vmem>>, vector<128x512xbf16>
    %cst_54 = arith.constant dense<0.000000e+00> : vector<8x512xf32>
    %176 = tpu.matmul %174, %175, %cst_54 {dimension_numbers = #tpu.dot_dimension_numbers<[1], [0], [0], [1], [0, 0, 1, 1], [], []>} : vector<8x128xbf16>, vector<128x512xbf16>, vector<8x512xf32> -> vector<8x512xf32>
    %177 = arith.addf %173, %176 : vector<8x512xf32>
    %178 = vector.extract_strided_slice %177 {offsets = [0, 0], sizes = [8, 128], strides = [1, 1]} : vector<8x512xf32> to vector<8x128xf32>
    %179 = arith.negf %178 : vector<8x128xf32>
    %180 = math.exp %179 : vector<8x128xf32>
    %cst_55 = arith.constant 1.000000e+00 : f32
    %181 = vector.broadcast %cst_55 : f32 to vector<8x128xf32>
    %182 = arith.addf %181, %180 : vector<8x128xf32>
    %183 = arith.divf %181, %182 : vector<8x128xf32>
    %184 = vector.extract_strided_slice %177 {offsets = [0, 128], sizes = [8, 128], strides = [1, 1]} : vector<8x512xf32> to vector<8x128xf32>
    %185 = arith.negf %184 : vector<8x128xf32>
    %186 = math.exp %185 : vector<8x128xf32>
    %cst_56 = arith.constant 1.000000e+00 : f32
    %187 = vector.broadcast %cst_56 : f32 to vector<8x128xf32>
    %188 = arith.addf %187, %186 : vector<8x128xf32>
    %189 = arith.divf %187, %188 : vector<8x128xf32>
    %190 = vector.extract_strided_slice %177 {offsets = [0, 256], sizes = [8, 128], strides = [1, 1]} : vector<8x512xf32> to vector<8x128xf32>
    %191 = math.tanh %190 : vector<8x128xf32>
    %192 = vector.extract_strided_slice %177 {offsets = [0, 384], sizes = [8, 128], strides = [1, 1]} : vector<8x512xf32> to vector<8x128xf32>
    %193 = arith.negf %192 : vector<8x128xf32>
    %194 = math.exp %193 : vector<8x128xf32>
    %cst_57 = arith.constant 1.000000e+00 : f32
    %195 = vector.broadcast %cst_57 : f32 to vector<8x128xf32>
    %196 = arith.addf %195, %194 : vector<8x128xf32>
    %197 = arith.divf %195, %196 : vector<8x128xf32>
    %198 = arith.mulf %189, %163 : vector<8x128xf32>
    %199 = arith.mulf %183, %191 : vector<8x128xf32>
    %200 = arith.addf %198, %199 : vector<8x128xf32>
    %201 = math.tanh %200 : vector<8x128xf32>
    %202 = arith.mulf %197, %201 : vector<8x128xf32>
    %c1_i32_58 = arith.constant 1 : i32
    %203 = arith.addi %c4_i32, %c1_i32_58 : i32
    %204 = vector.broadcast %203 : i32 to vector<8x128xi32>
    %205 = arith.cmpi eq, %18, %204 : vector<8x128xi32>
    %206 = arith.select %205, %202, %169 : vector<8x128xi1>, vector<8x128xf32>
    %c5_i32 = arith.constant 5 : i32
    %c8_i32_59 = arith.constant 8 : i32
    %207 = arith.muli %c5_i32, %c8_i32_59 : i32
    %208 = tpu.assume_multiple %207, 8 : i32
    %209 = arith.index_cast %208 : i32 to index
    %c0_60 = arith.constant 0 : index
    %210 = vector.load %arg11[%209, %c0_60] : memref<64x512xf32, #tpu.memory_space<vmem>>, vector<8x512xf32>
    %211 = arith.truncf %202 : vector<8x128xf32> to vector<8x128xbf16>
    %c0_61 = arith.constant 0 : index
    %c0_62 = arith.constant 0 : index
    %212 = vector.load %arg4[%c0_61, %c0_62] : memref<128x512xbf16, #tpu.memory_space<vmem>>, vector<128x512xbf16>
    %cst_63 = arith.constant dense<0.000000e+00> : vector<8x512xf32>
    %213 = tpu.matmul %211, %212, %cst_63 {dimension_numbers = #tpu.dot_dimension_numbers<[1], [0], [0], [1], [0, 0, 1, 1], [], []>} : vector<8x128xbf16>, vector<128x512xbf16>, vector<8x512xf32> -> vector<8x512xf32>
    %214 = arith.addf %210, %213 : vector<8x512xf32>
    %215 = vector.extract_strided_slice %214 {offsets = [0, 0], sizes = [8, 128], strides = [1, 1]} : vector<8x512xf32> to vector<8x128xf32>
    %216 = arith.negf %215 : vector<8x128xf32>
    %217 = math.exp %216 : vector<8x128xf32>
    %cst_64 = arith.constant 1.000000e+00 : f32
    %218 = vector.broadcast %cst_64 : f32 to vector<8x128xf32>
    %219 = arith.addf %218, %217 : vector<8x128xf32>
    %220 = arith.divf %218, %219 : vector<8x128xf32>
    %221 = vector.extract_strided_slice %214 {offsets = [0, 128], sizes = [8, 128], strides = [1, 1]} : vector<8x512xf32> to vector<8x128xf32>
    %222 = arith.negf %221 : vector<8x128xf32>
    %223 = math.exp %222 : vector<8x128xf32>
    %cst_65 = arith.constant 1.000000e+00 : f32
    %224 = vector.broadcast %cst_65 : f32 to vector<8x128xf32>
    %225 = arith.addf %224, %223 : vector<8x128xf32>
    %226 = arith.divf %224, %225 : vector<8x128xf32>
    %227 = vector.extract_strided_slice %214 {offsets = [0, 256], sizes = [8, 128], strides = [1, 1]} : vector<8x512xf32> to vector<8x128xf32>
    %228 = math.tanh %227 : vector<8x128xf32>
    %229 = vector.extract_strided_slice %214 {offsets = [0, 384], sizes = [8, 128], strides = [1, 1]} : vector<8x512xf32> to vector<8x128xf32>
    %230 = arith.negf %229 : vector<8x128xf32>
    %231 = math.exp %230 : vector<8x128xf32>
    %cst_66 = arith.constant 1.000000e+00 : f32
    %232 = vector.broadcast %cst_66 : f32 to vector<8x128xf32>
    %233 = arith.addf %232, %231 : vector<8x128xf32>
    %234 = arith.divf %232, %233 : vector<8x128xf32>
    %235 = arith.mulf %226, %200 : vector<8x128xf32>
    %236 = arith.mulf %220, %228 : vector<8x128xf32>
    %237 = arith.addf %235, %236 : vector<8x128xf32>
    %238 = math.tanh %237 : vector<8x128xf32>
    %239 = arith.mulf %234, %238 : vector<8x128xf32>
    %c1_i32_67 = arith.constant 1 : i32
    %240 = arith.addi %c5_i32, %c1_i32_67 : i32
    %241 = vector.broadcast %240 : i32 to vector<8x128xi32>
    %242 = arith.cmpi eq, %18, %241 : vector<8x128xi32>
    %243 = arith.select %242, %239, %206 : vector<8x128xi1>, vector<8x128xf32>
    %c6_i32 = arith.constant 6 : i32
    %c8_i32_68 = arith.constant 8 : i32
    %244 = arith.muli %c6_i32, %c8_i32_68 : i32
    %245 = tpu.assume_multiple %244, 8 : i32
    %246 = arith.index_cast %245 : i32 to index
    %c0_69 = arith.constant 0 : index
    %247 = vector.load %arg11[%246, %c0_69] : memref<64x512xf32, #tpu.memory_space<vmem>>, vector<8x512xf32>
    %248 = arith.truncf %239 : vector<8x128xf32> to vector<8x128xbf16>
    %c0_70 = arith.constant 0 : index
    %c0_71 = arith.constant 0 : index
    %249 = vector.load %arg4[%c0_70, %c0_71] : memref<128x512xbf16, #tpu.memory_space<vmem>>, vector<128x512xbf16>
    %cst_72 = arith.constant dense<0.000000e+00> : vector<8x512xf32>
    %250 = tpu.matmul %248, %249, %cst_72 {dimension_numbers = #tpu.dot_dimension_numbers<[1], [0], [0], [1], [0, 0, 1, 1], [], []>} : vector<8x128xbf16>, vector<128x512xbf16>, vector<8x512xf32> -> vector<8x512xf32>
    %251 = arith.addf %247, %250 : vector<8x512xf32>
    %252 = vector.extract_strided_slice %251 {offsets = [0, 0], sizes = [8, 128], strides = [1, 1]} : vector<8x512xf32> to vector<8x128xf32>
    %253 = arith.negf %252 : vector<8x128xf32>
    %254 = math.exp %253 : vector<8x128xf32>
    %cst_73 = arith.constant 1.000000e+00 : f32
    %255 = vector.broadcast %cst_73 : f32 to vector<8x128xf32>
    %256 = arith.addf %255, %254 : vector<8x128xf32>
    %257 = arith.divf %255, %256 : vector<8x128xf32>
    %258 = vector.extract_strided_slice %251 {offsets = [0, 128], sizes = [8, 128], strides = [1, 1]} : vector<8x512xf32> to vector<8x128xf32>
    %259 = arith.negf %258 : vector<8x128xf32>
    %260 = math.exp %259 : vector<8x128xf32>
    %cst_74 = arith.constant 1.000000e+00 : f32
    %261 = vector.broadcast %cst_74 : f32 to vector<8x128xf32>
    %262 = arith.addf %261, %260 : vector<8x128xf32>
    %263 = arith.divf %261, %262 : vector<8x128xf32>
    %264 = vector.extract_strided_slice %251 {offsets = [0, 256], sizes = [8, 128], strides = [1, 1]} : vector<8x512xf32> to vector<8x128xf32>
    %265 = math.tanh %264 : vector<8x128xf32>
    %266 = vector.extract_strided_slice %251 {offsets = [0, 384], sizes = [8, 128], strides = [1, 1]} : vector<8x512xf32> to vector<8x128xf32>
    %267 = arith.negf %266 : vector<8x128xf32>
    %268 = math.exp %267 : vector<8x128xf32>
    %cst_75 = arith.constant 1.000000e+00 : f32
    %269 = vector.broadcast %cst_75 : f32 to vector<8x128xf32>
    %270 = arith.addf %269, %268 : vector<8x128xf32>
    %271 = arith.divf %269, %270 : vector<8x128xf32>
    %272 = arith.mulf %263, %237 : vector<8x128xf32>
    %273 = arith.mulf %257, %265 : vector<8x128xf32>
    %274 = arith.addf %272, %273 : vector<8x128xf32>
    %275 = math.tanh %274 : vector<8x128xf32>
    %276 = arith.mulf %271, %275 : vector<8x128xf32>
    %c1_i32_76 = arith.constant 1 : i32
    %277 = arith.addi %c6_i32, %c1_i32_76 : i32
    %278 = vector.broadcast %277 : i32 to vector<8x128xi32>
    %279 = arith.cmpi eq, %18, %278 : vector<8x128xi32>
    %280 = arith.select %279, %276, %243 : vector<8x128xi1>, vector<8x128xf32>
    %c7_i32 = arith.constant 7 : i32
    %c8_i32_77 = arith.constant 8 : i32
    %281 = arith.muli %c7_i32, %c8_i32_77 : i32
    %282 = tpu.assume_multiple %281, 8 : i32
    %283 = arith.index_cast %282 : i32 to index
    %c0_78 = arith.constant 0 : index
    %284 = vector.load %arg11[%283, %c0_78] : memref<64x512xf32, #tpu.memory_space<vmem>>, vector<8x512xf32>
    %285 = arith.truncf %276 : vector<8x128xf32> to vector<8x128xbf16>
    %c0_79 = arith.constant 0 : index
    %c0_80 = arith.constant 0 : index
    %286 = vector.load %arg4[%c0_79, %c0_80] : memref<128x512xbf16, #tpu.memory_space<vmem>>, vector<128x512xbf16>
    %cst_81 = arith.constant dense<0.000000e+00> : vector<8x512xf32>
    %287 = tpu.matmul %285, %286, %cst_81 {dimension_numbers = #tpu.dot_dimension_numbers<[1], [0], [0], [1], [0, 0, 1, 1], [], []>} : vector<8x128xbf16>, vector<128x512xbf16>, vector<8x512xf32> -> vector<8x512xf32>
    %288 = arith.addf %284, %287 : vector<8x512xf32>
    %289 = vector.extract_strided_slice %288 {offsets = [0, 0], sizes = [8, 128], strides = [1, 1]} : vector<8x512xf32> to vector<8x128xf32>
    %290 = arith.negf %289 : vector<8x128xf32>
    %291 = math.exp %290 : vector<8x128xf32>
    %cst_82 = arith.constant 1.000000e+00 : f32
    %292 = vector.broadcast %cst_82 : f32 to vector<8x128xf32>
    %293 = arith.addf %292, %291 : vector<8x128xf32>
    %294 = arith.divf %292, %293 : vector<8x128xf32>
    %295 = vector.extract_strided_slice %288 {offsets = [0, 128], sizes = [8, 128], strides = [1, 1]} : vector<8x512xf32> to vector<8x128xf32>
    %296 = arith.negf %295 : vector<8x128xf32>
    %297 = math.exp %296 : vector<8x128xf32>
    %cst_83 = arith.constant 1.000000e+00 : f32
    %298 = vector.broadcast %cst_83 : f32 to vector<8x128xf32>
    %299 = arith.addf %298, %297 : vector<8x128xf32>
    %300 = arith.divf %298, %299 : vector<8x128xf32>
    %301 = vector.extract_strided_slice %288 {offsets = [0, 256], sizes = [8, 128], strides = [1, 1]} : vector<8x512xf32> to vector<8x128xf32>
    %302 = math.tanh %301 : vector<8x128xf32>
    %303 = vector.extract_strided_slice %288 {offsets = [0, 384], sizes = [8, 128], strides = [1, 1]} : vector<8x512xf32> to vector<8x128xf32>
    %304 = arith.negf %303 : vector<8x128xf32>
    %305 = math.exp %304 : vector<8x128xf32>
    %cst_84 = arith.constant 1.000000e+00 : f32
    %306 = vector.broadcast %cst_84 : f32 to vector<8x128xf32>
    %307 = arith.addf %306, %305 : vector<8x128xf32>
    %308 = arith.divf %306, %307 : vector<8x128xf32>
    %309 = arith.mulf %300, %274 : vector<8x128xf32>
    %310 = arith.mulf %294, %302 : vector<8x128xf32>
    %311 = arith.addf %309, %310 : vector<8x128xf32>
    %312 = math.tanh %311 : vector<8x128xf32>
    %313 = arith.mulf %308, %312 : vector<8x128xf32>
    %c1_i32_85 = arith.constant 1 : i32
    %314 = arith.addi %c7_i32, %c1_i32_85 : i32
    %315 = vector.broadcast %314 : i32 to vector<8x128xi32>
    %316 = arith.cmpi eq, %18, %315 : vector<8x128xi32>
    %317 = arith.select %316, %313, %280 : vector<8x128xi1>, vector<8x128xf32>
    %c8_i32_86 = arith.constant 8 : i32
    %318 = arith.truncf %317 : vector<8x128xf32> to vector<8x128xbf16>
    %c0_87 = arith.constant 0 : index
    %c0_88 = arith.constant 0 : index
    %319 = vector.load %arg6[%c0_87, %c0_88] : memref<128x128xbf16, #tpu.memory_space<vmem>>, vector<128x128xbf16>
    %cst_89 = arith.constant dense<0.000000e+00> : vector<8x128xf32>
    %320 = tpu.matmul %318, %319, %cst_89 {dimension_numbers = #tpu.dot_dimension_numbers<[1], [0], [0], [1], [0, 0, 1, 1], [], []>} : vector<8x128xbf16>, vector<128x128xbf16>, vector<8x128xf32> -> vector<8x128xf32>
    %c0_90 = arith.constant 0 : index
    %c0_91 = arith.constant 0 : index
    %321 = vector.load %arg7[%c0_90, %c0_91] : memref<1x128xf32, #tpu.memory_space<vmem>>, vector<1x128xf32>
    %322 = vector.broadcast %321 : vector<1x128xf32> to vector<8x128xf32>
    %323 = arith.addf %320, %322 : vector<8x128xf32>
    %cst_92 = arith.constant 0.000000e+00 : f32
    %324 = vector.broadcast %cst_92 : f32 to vector<8x128xf32>
    %325 = arith.maximumf %323, %324 : vector<8x128xf32>
    %326 = arith.truncf %325 : vector<8x128xf32> to vector<8x128xbf16>
    %c0_93 = arith.constant 0 : index
    %c0_94 = arith.constant 0 : index
    %327 = vector.load %arg8[%c0_93, %c0_94] : memref<128x128xbf16, #tpu.memory_space<vmem>>, vector<128x128xbf16>
    %cst_95 = arith.constant dense<0.000000e+00> : vector<8x128xf32>
    %328 = tpu.matmul %326, %327, %cst_95 {dimension_numbers = #tpu.dot_dimension_numbers<[1], [0], [0], [1], [0, 0, 1, 1], [], []>} : vector<8x128xbf16>, vector<128x128xbf16>, vector<8x128xf32> -> vector<8x128xf32>
    %c0_96 = arith.constant 0 : index
    %c0_97 = arith.constant 0 : index
    %329 = vector.load %arg9[%c0_96, %c0_97] : memref<1x128xf32, #tpu.memory_space<vmem>>, vector<1x128xf32>
    %330 = vector.broadcast %329 : vector<1x128xf32> to vector<8x128xf32>
    %331 = arith.addf %328, %330 : vector<8x128xf32>
    %c0_98 = arith.constant 0 : index
    %c0_99 = arith.constant 0 : index
    %332 = vector.load %arg10[%c0_98, %c0_99] : memref<8x128xf32, #tpu.memory_space<vmem>>, vector<8x128xf32>
    tpu.vector_store %arg10[%c0_98, %c0_99], %331 {strides = array<i32>} : memref<8x128xf32, #tpu.memory_space<vmem>>, vector<8x128xf32>,
    return
  }
}

</mosaic_0001>

<bundles_post_ra>
// kernel: ques_forward.1
= control target key start
LH: loop header
LB: loop body
LE: loop exit
PB: predicated region body
PF: predicated region fallthrough
CT: control target
= control target key end

     0   :  { %15 = vsyncpa [#allocation4], 0  ;;  %s3427_s0 = inlined_call_operand.vmem [shape: s32[64,1], index: 0, kind: input, shape index: {}]   ;;  %s3428_s1 = inlined_call_operand.vmem [shape: s32[8,1], index: 1, kind: input, shape index: {}]   ;;  %s3429_s2 = inlined_call_operand.vmem [shape: bf16[128,128], index: 2, kind: input, shape index: {}]   ;;  %s3430_s3 = inlined_call_operand.hbm [shape: bf16[128,512], index: 3, kind: input, shape index: {}]   ;;  %s3431_s4 = inlined_call_operand.hbm [shape: bf16[128,512], index: 4, kind: input, shape index: {}]   ;;  %s3432_s5 = inlined_call_operand.vmem [shape: f32[1,512], index: 5, kind: input, shape index: {}]   ;;  %s3433_s6 = inlined_call_operand.hbm [shape: bf16[128,128], index: 6, kind: input, shape index: {}]   ;;  %s3434_s7 = inlined_call_operand.vmem [shape: f32[1,128], index: 7, kind: input, shape index: {}]   ;;  %s3435_s8 = inlined_call_operand.hbm [shape: bf16[128,128], index: 8, kind: input, shape index: {}]   ;;  %s3436_s9 = inlined_call_operand.vmem [shape: f32[1,128], index: 9, kind: input, shape index: {}]   ;;  %s3437_s10 = inlined_call_operand.vmem [shape: f32[8,128], index: 10, kind: output, shape index: {}]  }
   0x1   :  { %16 = vsyncpa [#allocation6], 0 }
   0x2   :  { %17 = vsyncpa [#allocation9], 0  ;;  %s41_s15 = sshll.u32 %s3431_s4, 4  ;;  %s2740_s16 = smov [#allocation5]   ;;  %s42_s15 = int_to_ptr.hbm [resolvable:$true] %s41_s15 }
   0x3   :  { %s43_s17 = sshll.u32 %s2740_s16, 4  ;;  %s28_s20 = sshll.u32 %s3430_s3, 4  ;;  %s44_s17 = int_to_ptr.vmem [resolvable:$true] %s43_s17  ;;  %s29_s20 = int_to_ptr.hbm [resolvable:$true] %s28_s20 }
   0x4   :  { %s2741_s21 = smov 256   ;;  %s2742_s22 = smov 16  }
   0x5   :  { %49 = dma.hbm_to_vmem [thread:$0]  %s42_s15, 4096, %s44_s17, [#allocation6], %s2741_s21, %s2741_s21, %s2742_s22  }
   0x6   :  { %s2743_s23 = smov [#allocation3]   ;;  %s56_s27 = sshll.u32 %s3433_s6, 4  ;;  %s57_s27 = int_to_ptr.hbm [resolvable:$true] %s56_s27 }
   0x7   :  { %s30_s24 = sshll.u32 %s2743_s23, 4  ;;  %s2744_s4 = smov [#allocation7]   ;;  %s31_s24 = int_to_ptr.vmem [resolvable:$true] %s30_s24 }
   0x8   :  { %36 = dma.hbm_to_vmem [thread:$0]  %s29_s20, 4096, %s31_s24, [#allocation4], %s2741_s21, %s2741_s21, %s2742_s22  }
   0x9   :  { %s58_s28 = sshll.u32 %s2744_s4, 4  ;;  %s71_s3 = sshll.u32 %s3435_s8, 4  ;;  %s59_s28 = int_to_ptr.vmem [resolvable:$true] %s58_s28  ;;  %s72_s3 = int_to_ptr.hbm [resolvable:$true] %s71_s3 }
   0xa   :  { %s2745_s11 = smov 64   ;;  %s2746_s12 = smov 4  }
   0xb   :  { %64 = dma.hbm_to_vmem [thread:$0]  %s57_s27, 1024, %s59_s28, [#allocation6], %s2745_s11, %s2745_s11, %s2746_s12  }
   0xc   :  { %s2747_s13 = smov [#allocation8]  }
   0xd   :  { %s73_s14 = sshll.u32 %s2747_s13, 4  ;;  %s74_s14 = int_to_ptr.vmem [resolvable:$true] %s73_s14 }
   0xe   :  { %79 = dma.hbm_to_vmem [thread:$0]  %s72_s3, 1024, %s74_s14, [#allocation9], %s2745_s11, %s2745_s11, %s2746_s12  }
   0xf   :  { %2734 = dma.done.wait [#allocation4], 4096  }
  0x10   :  { %2735 = vsyncadd [#allocation4], 4294963200 }
  0x11   :  { %2736 = dma.done.wait [#allocation6], 5120  }
  0x12   :  { %2737 = vsyncadd [#allocation6], 4294962176 }
  0x13   :  { %2738 = dma.done.wait [#allocation9], 1024  }
  0x14   :  { %2739 = vsyncadd [#allocation9], 4294966272  ;;  %v2748_v0 = vmov 0   ;;  %v103_v1 = vld [vmem:[%s3427_s0 + $0x10] sm:$0xff]  ;;  %v101_v2 = vld [vmem:[%s3427_s0] sm:$0xff]  ;;  %v99_v19 = vlaneseq }
  0x15   :  { %2506 = vset.pattern.permute.xlu1 %v2748_v0  ;;  %2505 = vset.pattern.permute.xlu0 %v2748_v0  ;;  %v105_v3 = vld [vmem:[%s3427_s0 + $0x20] sm:$0xff]  ;;  %v2414_v4 = vld [vmem:[%s3429_s2 + $0x38] sm:$0xff]  ;;  %v102_v6 = vld [vmem:[%s3427_s0 + $0x8] sm:$0xff]  ;;  %v2749_v22 = vmov 1.0|1.0  }
  0x16   :  { %2507 = vset.pattern.permute.xlu2 %v2748_v0  ;;  %116 = vperm.xlu1 %2506, %v103_v1   ;;  %v104_v5 = vld [vmem:[%s3427_s0 + $0x18] sm:$0xff]  ;;  %v2413_v7 = vld [vmem:[%s3429_s2 + $0x30] sm:$0xff]  ;;  %v106_v8 = vld [vmem:[%s3427_s0 + $0x28] sm:$0xff]  ;;  %v2871_v20 = vand.u32 127, %v99_v19 }
  0x17   :  { %110 = vperm.xlu0 %2505, %v101_v2   ;;  %122 = vperm.xlu2 %2507, %v105_v3   ;;  %v2412_v9 = vld [vmem:[%s3429_s2 + $0x28] sm:$0xff]  ;;  %v108_v10 = vld [vmem:[%s3427_s0 + $0x38] sm:$0xff]  ;;  %v107_v11 = vld [vmem:[%s3427_s0 + $0x30] sm:$0xff] }
  0x18   :  { %225 = vmatpush.bf16.msra.mxu0 %v2414_v4  ;;  %v2411_v12 = vld [vmem:[%s3429_s2 + $0x20] sm:$0xff]  ;;  %v2410_v14 = vld [vmem:[%s3429_s2 + $0x18] sm:$0xff]  ;;  %v2409_v15 = vld [vmem:[%s3429_s2 + $0x10] sm:$0xff] }
  0x19   :  { %v608_v13 = vld [vmem:[%s3428_s1] sm:$0xff]  ;;  %v2408_v16 = vld [vmem:[%s3429_s2 + $0x8] sm:$0xff]  ;;  %v2445_v26 = vld [vmem:[#allocation3 + $0xec] sm:$0xf0] }
  0x1a   :  { %v2407_v17 = vld [vmem:[%s3429_s2] sm:$0xff]  ;;  %v2179_v30 = vld [vmem:[#allocation3 + $0xf0] sm:$0xf0]  ;;  %v2185_v31 = vld [vmem:[#allocation3 + $0xe8] sm:$0xf] }
  0x1b   :  { %v2177_v25 = vld [vmem:[#allocation3 + $0xe0] sm:$0xf]  ;;  %v2443_v27 = vld [vmem:[#allocation3 + $0xe4] sm:$0xf]  ;;  %v2446_v32 = vld [vmem:[#allocation3 + $0xf4] sm:$0xf0] }
  0x1c   :  { %226 = vmatpush.bf16.msra.mxu0 %v2413_v7  ;;  %v2178_v29 = vor.u32 %v2445_v26, %v2177_v25  ;;  %v2182_v33 = vor.u32 %v2443_v27, %v2179_v30  ;;  %v2186_v34 = vor.u32 %v2446_v32, %v2185_v31  ;;  %v2444_v35 = vld [vmem:[#allocation3 + $0xec] sm:$0xf]  ;;  %v2187_v36 = vld [vmem:[#allocation3 + $0xf8] sm:$0xf0]  ;;  %v2161_v37 = vld [vmem:[#allocation3 + $0xc0] sm:$0xf] }
  0x1d   :  { %v2190_v38 = vor.u32 %v2444_v35, %v2187_v36  ;;  %v2441_v39 = vld [vmem:[#allocation3 + $0xcc] sm:$0xf0]  ;;  %v2439_v40 = vld [vmem:[#allocation3 + $0xc4] sm:$0xf]  ;;  %v2163_v41 = vld [vmem:[#allocation3 + $0xd0] sm:$0xf0] }
  0x1e   :  { %119 = vperm.xlu1 %2506, %v104_v5   ;;  %460 = vmatpush.bf16.msra.mxu1 %v2178_v29  ;;  %v2162_v42 = vor.u32 %v2441_v39, %v2161_v37  ;;  %v2166_v43 = vor.u32 %v2439_v40, %v2163_v41  ;;  %v2169_v44 = vld [vmem:[#allocation3 + $0xc8] sm:$0xf]  ;;  %v2442_v45 = vld [vmem:[#allocation3 + $0xd4] sm:$0xf0]  ;;  %v2440_v46 = vld [vmem:[#allocation3 + $0xcc] sm:$0xf] }
  0x1f   :  { %113 = vperm.xlu0 %2505, %v102_v6   ;;  %125 = vperm.xlu2 %2507, %v106_v8   ;;  %v2170_v47 = vor.u32 %v2442_v45, %v2169_v44  ;;  %v2171_v48 = vld [vmem:[#allocation3 + $0xd8] sm:$0xf0]  ;;  %v2145_v49 = vld [vmem:[#allocation3 + $0xa0] sm:$0xf]  ;;  %v2437_v50 = vld [vmem:[#allocation3 + $0xac] sm:$0xf0] }
  0x20   :  { %227 = vmatpush.bf16.msra.mxu0 %v2412_v9  ;;  %489 = vmatpush.bf16.msra.mxu2 %v2182_v33  ;;  %v2174_v51 = vor.u32 %v2440_v46, %v2171_v48  ;;  %v2435_v52 = vld [vmem:[#allocation3 + $0xa4] sm:$0xf]  ;;  %v2147_v53 = vld [vmem:[#allocation3 + $0xb0] sm:$0xf0]  ;;  %v2153_v54 = vld [vmem:[#allocation3 + $0xa8] sm:$0xf]  ;;  %v2146_v55 = vor.u32 %v2437_v50, %v2145_v49 }
  0x21   :  { %518 = vmatpush.bf16.msra.mxu3 %v2186_v34  ;;  %v2438_v56 = vld [vmem:[#allocation3 + $0xb4] sm:$0xf0]  ;;  %v2436_v57 = vld [vmem:[#allocation3 + $0xac] sm:$0xf]  ;;  %v2155_v58 = vld [vmem:[#allocation3 + $0xb8] sm:$0xf0]  ;;  %v2150_v59 = vor.u32 %v2435_v52, %v2147_v53 }
  0x22   :  { %461 = vmatpush.bf16.msra.mxu1 %v2162_v42  ;;  %v2154_v60 = vor.u32 %v2438_v56, %v2153_v54  ;;  %v2129_v61 = vld [vmem:[#allocation3 + $0x80] sm:$0xf]  ;;  %v2433_v62 = vld [vmem:[#allocation3 + $0x8c] sm:$0xf0]  ;;  %v2158_v63 = vor.u32 %v2436_v57, %v2155_v58  ;;  %v2431_v1 = vld [vmem:[#allocation3 + $0x84] sm:$0xf] }
  0x23   :  { %v2131_v2 = vld [vmem:[#allocation3 + $0x90] sm:$0xf0]  ;;  %v2137_v3 = vld [vmem:[#allocation3 + $0x88] sm:$0xf]  ;;  %v2434_v4 = vld [vmem:[#allocation3 + $0x94] sm:$0xf0]  ;;  %v2130_v8 = vor.u32 %v2433_v62, %v2129_v61 }
  0x24   :  { %228 = vmatpush.bf16.msra.mxu0 %v2411_v12  ;;  %490 = vmatpush.bf16.msra.mxu2 %v2166_v43  ;;  %v2432_v5 = vld [vmem:[#allocation3 + $0x8c] sm:$0xf]  ;;  %v2139_v6 = vld [vmem:[#allocation3 + $0x98] sm:$0xf0]  ;;  %v2134_v9 = vor.u32 %v2431_v1, %v2131_v2  ;;  %v2138_v12 = vor.u32 %v2434_v4, %v2137_v3  ;;  %v2425_v29 = vld [vmem:[#allocation3 + $0x4c] sm:$0xf0] }
  0x25   :  { %519 = vmatpush.bf16.msra.mxu3 %v2170_v47  ;;  %v2123_v19 = vld [vmem:[#allocation3 + $0x78] sm:$0xf0]  ;;  %v2423_v30 = vld [vmem:[#allocation3 + $0x44] sm:$0xf]  ;;  %v2099_v32 = vld [vmem:[#allocation3 + $0x50] sm:$0xf0] }
  0x26   :  { %131 = vperm.xlu1 %2506, %v108_v10   ;;  %462 = vmatpush.bf16.msra.mxu1 %v2146_v55  ;;  %v2113_v10 = vld [vmem:[#allocation3 + $0x60] sm:$0xf]  ;;  %v2105_v33 = vld [vmem:[#allocation3 + $0x48] sm:$0xf]  ;;  %v2426_v34 = vld [vmem:[#allocation3 + $0x54] sm:$0xf0]  ;;  %v2102_v35 = vor.u32 %v2423_v30, %v2099_v32 }
  0x27   :  { %128 = vperm.xlu0 %2505, %v107_v11   ;;  %610 = vperm.xlu2 %2507, %v608_v13   ;;  %v2429_v11 = vld [vmem:[#allocation3 + $0x6c] sm:$0xf0]  ;;  %v2142_v13 = vor.u32 %v2432_v5, %v2139_v6  ;;  %v2106_v36 = vor.u32 %v2426_v34, %v2105_v33  ;;  %v2424_v37 = vld [vmem:[#allocation3 + $0x4c] sm:$0xf]  ;;  %v2081_v40 = vld [vmem:[#allocation3 + $0x20] sm:$0xf] }
  0x28   :  { %229 = vmatpush.bf16.msra.mxu0 %v2410_v14  ;;  %491 = vmatpush.bf16.msra.mxu2 %v2150_v59  ;;  %v2427_v14 = vld [vmem:[#allocation3 + $0x64] sm:$0xf]  ;;  %v2421_v41 = vld [vmem:[#allocation3 + $0x2c] sm:$0xf0]  ;;  %v2089_v43 = vld [vmem:[#allocation3 + $0x28] sm:$0xf] }
  0x29   :  { %520 = vmatpush.bf16.msra.mxu3 %v2154_v60  ;;  %v2419_v42 = vld [vmem:[#allocation3 + $0x24] sm:$0xf]  ;;  %v2422_v44 = vld [vmem:[#allocation3 + $0x34] sm:$0xf0]  ;;  %v2420_v47 = vld [vmem:[#allocation3 + $0x2c] sm:$0xf] }
  0x2a   :  { %463 = vmatpush.bf16.msra.mxu1 %v2130_v8  ;;  %v2090_v46 = vor.u32 %v2422_v44, %v2089_v43  ;;  %v2091_v48 = vld [vmem:[#allocation3 + $0x38] sm:$0xf0]  ;;  %v2065_v50 = vld [vmem:[#allocation3] sm:$0xf]  ;;  %v2415_v52 = vld [vmem:[#allocation3 + $0x4] sm:$0xf] }
  0x2b   :  { %v2094_v49 = vor.u32 %v2420_v47, %v2091_v48  ;;  %v2067_v54 = vld [vmem:[#allocation3 + $0x10] sm:$0xf0]  ;;  %v2073_v55 = vld [vmem:[#allocation3 + $0x8] sm:$0xf]  ;;  %v2418_v56 = vld [vmem:[#allocation3 + $0x14] sm:$0xf0] }
  0x2c   :  { %230 = vmatpush.bf16.msra.mxu0 %v2409_v15  ;;  %v2115_v15 = vld [vmem:[#allocation3 + $0x70] sm:$0xf0]  ;;  %492 = vmatpush.bf16.msra.mxu2 %v2134_v9  ;;  %v2070_v57 = vor.u32 %v2415_v52, %v2067_v54  ;;  %v2074_v58 = vor.u32 %v2418_v56, %v2073_v55  ;;  %v2416_v59 = vld [vmem:[#allocation3 + $0xc] sm:$0xf]  ;;  %v2075_v60 = vld [vmem:[#allocation3 + $0x18] sm:$0xf0] }
  0x2d   :  { %521 = vmatpush.bf16.msra.mxu3 %v2138_v12  ;;  %v2078_v61 = vor.u32 %v2416_v59, %v2075_v60  ;;  %v2475_v62 = vld [vmem:[#allocation5 + $0xe4] sm:$0xf]  ;;  %v2305_v1 = vld [vmem:[#allocation5 + $0xe0] sm:$0xf]  ;;  %v2477_v3 = vld [vmem:[#allocation5 + $0xec] sm:$0xf0] }
  0x2e   :  { %v2895_v4 = vor.u32 %v2477_v3, %v2305_v1  ;;  %v2471_v5 = vld [vmem:[#allocation5 + $0xc4] sm:$0xf]  ;;  %v2291_v6 = vld [vmem:[#allocation5 + $0xd0] sm:$0xf0]  ;;  %v2473_v9 = vld [vmem:[#allocation5 + $0xcc] sm:$0xf0] }
  0x2f   :  { %v2899_v8 = vor.u32 %v2471_v5, %v2291_v6  ;;  %v2275_v12 = vld [vmem:[#allocation5 + $0xb0] sm:$0xf0]  ;;  %v2474_v32 = vld [vmem:[#allocation5 + $0xd4] sm:$0xf0]  ;;  %v2459_v34 = vld [vmem:[#allocation5 + $0x64] sm:$0xf] }
  0x30   :  { %231 = vmatpush.bf16.msra.mxu0 %v2408_v16  ;;  %v2121_v16 = vld [vmem:[#allocation3 + $0x68] sm:$0xf]  ;;  %v2457_v43 = vld [vmem:[#allocation5 + $0x4c] sm:$0xf0]  ;;  %v2455_v44 = vld [vmem:[#allocation5 + $0x44] sm:$0xf] }
  0x31   :  { %v2209_v48 = vld [vmem:[#allocation5 + $0x20] sm:$0xf]  ;;  %v2466_v52 = vld [vmem:[#allocation5 + $0x94] sm:$0xf0]  ;;  %v2249_v59 = vld [vmem:[#allocation5 + $0x68] sm:$0xf] }
  0x32   :  { %v2193_v56 = vld [vmem:[#allocation5] sm:$0xf]  ;;  %v2462_v60 = vld [vmem:[#allocation5 + $0x74] sm:$0xf0]  ;;  %v2451_v1 = vld [vmem:[#allocation5 + $0x24] sm:$0xf] }
  0x33   :  { %v2211_v3 = vld [vmem:[#allocation5 + $0x30] sm:$0xf0]  ;;  %v2233_v6 = vld [vmem:[#allocation5 + $0x48] sm:$0xf] }
  0x34   :  { %232 = vmatpush.bf16.msra.mxu0 %v2407_v17  ;;  %v2430_v17 = vld [vmem:[#allocation3 + $0x74] sm:$0xf0] }
  0x38   :  { %547 = vmatpush.bf16.msrb.mxu0 %v2190_v38  ;;  %v2107_v38 = vld [vmem:[#allocation3 + $0x58] sm:$0xf0] }
  0x39   :  { %v2110_v39 = vor.u32 %v2424_v37, %v2107_v38  ;;  %v2461_v38 = vld [vmem:[#allocation5 + $0x6c] sm:$0xf0] }
  0x3c   :  { %548 = vmatpush.bf16.msrb.mxu0 %v2174_v51  ;;  %v2417_v51 = vld [vmem:[#allocation3 + $0xc] sm:$0xf0] }
  0x3d   :  { %v2066_v53 = vor.u32 %v2417_v51, %v2065_v50  ;;  %v2265_v51 = vld [vmem:[#allocation5 + $0x88] sm:$0xf] }
  0x40   :  { %549 = vmatpush.bf16.msrb.mxu0 %v2158_v63  ;;  %v2307_v63 = vld [vmem:[#allocation5 + $0xf0] sm:$0xf0] }
  0x41   :  { %v2893_v2 = vor.u32 %v2475_v62, %v2307_v63  ;;  %v2950_v62 = vor.u32 %v2462_v60, %v2249_v59  ;;  %v2315_v63 = vld [vmem:[#allocation5 + $0xf8] sm:$0xf0] }
  0x44   :  { %550 = vmatpush.bf16.msrb.mxu0 %v2142_v13  ;;  %v2273_v13 = vld [vmem:[#allocation5 + $0xa0] sm:$0xf] }
  0x71   :  { %v2879_v28 = vpop.permute.xlu2 %122 }
  0x72   :  { %vm137_vm6 = vcmp.eq.s32.totalorder %v2871_v20, %v2879_v28  ;;  %v2097_v28 = vld [vmem:[#allocation3 + $0x40] sm:$0xf] }
  0x73   :  { %v2098_v31 = vor.u32 %v2425_v29, %v2097_v28 }
  0x79   :  { %v126_v7 = vpop.permute.xlu2 %125 }
  0x7a   :  { %vm138_vm7 = vcmp.eq.s32.totalorder %v2871_v20, %v126_v7  ;;  %v2289_v7 = vld [vmem:[#allocation5 + $0xc0] sm:$0xf] }
  0x7b   :  { %vm2059_vm8 = vmpackc.low %vm138_vm7, %vm137_vm6 }
  0x88   :  { %v117_v23 = vpop.permute.xlu1 %116 }
  0x89   :  { %v111_v18 = vpop.permute.xlu0 %110  ;;  %vm135_vm3 = vcmp.eq.s32.totalorder %v2871_v20, %v117_v23  ;;  %v2118_v23 = vor.u32 %v2427_v14, %v2115_v15  ;;  %v2469_v15 = vld [vmem:[#allocation5 + $0xac] sm:$0xf0] }
  0x8a   :  { %vm133_vm1 = vcmp.eq.s32.totalorder %v2871_v20, %v111_v18  ;;  %v2428_v18 = vld [vmem:[#allocation3 + $0x6c] sm:$0xf] }
  0x8b   :  { %v2126_v25 = vor.u32 %v2428_v18, %v2123_v19  ;;  %493 = vmatpush.bf16.msra.mxu2 %v2118_v23  ;;  %v2313_v18 = vld [vmem:[#allocation5 + $0xe8] sm:$0xf]  ;;  %v2478_v19 = vld [vmem:[#allocation5 + $0xf4] sm:$0xf0] }
  0x8c   :  { %v2911_v23 = vor.u32 %v2478_v19, %v2313_v18  ;;  %v2195_v18 = vld [vmem:[#allocation5 + $0x10] sm:$0xf0]  ;;  %v2217_v19 = vld [vmem:[#allocation5 + $0x28] sm:$0xf] }
  0x8d   :  { %551 = vmatpush.bf16.msrb.mxu0 %v2126_v25  ;;  %v2257_v25 = vld [vmem:[#allocation5 + $0x80] sm:$0xf] }
  0x8f   :  { %494 = vmatpush.bf16.msra.mxu2 %v2102_v35  ;;  %v2243_v35 = vld [vmem:[#allocation5 + $0x70] sm:$0xf0] }
  0x90   :  { %v120_v24 = vpop.permute.xlu1 %119  ;;  %v2924_v37 = vor.u32 %v2459_v34, %v2243_v35  ;;  %v2450_v34 = vld [vmem:[#allocation5 + $0x14] sm:$0xf0]  ;;  %v2464_v35 = vld [vmem:[#allocation5 + $0x8c] sm:$0xf] }
  0x91   :  { %v114_v21 = vpop.permute.xlu0 %113  ;;  %vm136_vm4 = vcmp.eq.s32.totalorder %v2871_v20, %v120_v24  ;;  %v2122_v24 = vor.u32 %v2430_v17, %v2121_v16  ;;  %552 = vmatpush.bf16.msrb.mxu0 %v2110_v39  ;;  %v2907_v16 = vor.u32 %v2469_v15, %v2273_v13 }
  0x92   :  { %vm134_vm0 = vcmp.eq.s32.totalorder %v2871_v20, %v114_v21  ;;  %vm2057_vm5 = vmpackc.low %vm136_vm4, %vm135_vm3  ;;  %v2114_v21 = vor.u32 %v2429_v11, %v2113_v10  ;;  %v2901_v10 = vor.u32 %v2473_v9, %v2289_v7  ;;  %v2467_v11 = vld [vmem:[#allocation5 + $0xa4] sm:$0xf]  ;;  %v2955_v7 = vor.u32 %v2451_v1, %v2211_v3  ;;  %v2458_v9 = vld [vmem:[#allocation5 + $0x54] sm:$0xf0] }
  0x93   :  { %vm2055_vm2 = vmpackc.low %vm134_vm0, %vm133_vm1  ;;  %522 = vmatpush.bf16.msra.mxu3 %v2122_v24  ;;  %v2905_v14 = vor.u32 %v2467_v11, %v2275_v12  ;;  %v2259_v24 = vld [vmem:[#allocation5 + $0x90] sm:$0xf0]  ;;  %v2472_v11 = vld [vmem:[#allocation5 + $0xcc] sm:$0xf]  ;;  %v2959_v13 = vor.u32 %v2458_v9, %v2233_v6 }
  0x94   :  { %2056 = vmatmul.msk.bf16.vlgmr.msra.gmra.mxu0 %vm2055_vm2, %v2749_v22  ;;  %464 = vmatpush.bf16.msra.mxu1 %v2114_v21  ;;  %v2463_v21 = vld [vmem:[#allocation5 + $0x84] sm:$0xf]  ;;  %v2299_v12 = vld [vmem:[#allocation5 + $0xd8] sm:$0xf0]  ;;  %v290_v1 = vld [vmem:[%s3432_s5] sm:$0xf] }
  0x95   :  { %553 = vmatpush.bf16.msrb.mxu0 %v2094_v49  ;;  %v2453_v49 = vld [vmem:[#allocation5 + $0x2c] sm:$0xf0]  ;;  %v2961_v15 = vor.u32 %v2472_v11, %v2299_v12  ;;  %v3064_v9 = vperm.slane %v290_v1, 3 }
  0x96   :  { %v2941_v50 = vor.u32 %v2453_v49, %v2209_v48  ;;  %v2235_v48 = vld [vmem:[#allocation5 + $0x58] sm:$0xf0] }
  0x97   :  { %523 = vmatpush.bf16.msra.mxu3 %v2106_v36  ;;  %v2241_v36 = vld [vmem:[#allocation5 + $0x60] sm:$0xf]  ;;  %3439 = vst [vmem:[#allocation13_spill] sm:$0xff] %v3064_v9 }
  0x98   :  { %v132_v26 = vpop.permute.xlu1 %131  ;;  %465 = vmatpush.bf16.msra.mxu1 %v2098_v31  ;;  %v2297_v31 = vld [vmem:[#allocation5 + $0xc8] sm:$0xf]  ;;  %v2927_v39 = vor.u32 %v2461_v38, %v2241_v36  ;;  %v2267_v36 = vld [vmem:[#allocation5 + $0x98] sm:$0xf0] }
  0x99   :  { %v129_v27 = vpop.permute.xlu0 %128  ;;  %vm140_vm9 = vcmp.eq.s32.totalorder %v2871_v20, %v132_v26  ;;  %554 = vmatpush.bf16.msrb.mxu0 %v2078_v61  ;;  %v2465_v26 = vld [vmem:[#allocation5 + $0x8c] sm:$0xf0]  ;;  %v2921_v33 = vor.u32 %v2474_v32, %v2297_v31  ;;  %v2476_v61 = vld [vmem:[#allocation5 + $0xec] sm:$0xf]  ;;  %v2201_v32 = vld [vmem:[#allocation5 + $0x8] sm:$0xf] }
  0x9a   :  { %vm139_vm10 = vcmp.eq.s32.totalorder %v2871_v20, %v129_v27  ;;  %v2082_v20 = vor.u32 %v2421_v41, %v2081_v40  ;;  %v2913_v27 = vor.u32 %v2463_v21, %v2259_v24  ;;  %v2915_v28 = vor.u32 %v2465_v26, %v2257_v25  ;;  %v2281_v41 = vld [vmem:[#allocation5 + $0xa8] sm:$0xf]  ;;  %v2454_v24 = vld [vmem:[#allocation5 + $0x34] sm:$0xf0]  ;;  %v2468_v25 = vld [vmem:[#allocation5 + $0xac] sm:$0xf] }
  0x9b   :  { %vm2061_vm11 = vmpackc.low %vm140_vm9, %vm139_vm10  ;;  %524 = vmatpush.bf16.msra.mxu3 %v2090_v46  ;;  %v2952_v5 = vor.u32 %v2476_v61, %v2315_v63  ;;  %v2283_v26 = vld [vmem:[#allocation5 + $0xb8] sm:$0xf0]  ;;  %v2977_v38 = vor.u32 %v2450_v34, %v2201_v32  ;;  %v3083_v34 = vperm.slane %v290_v1, 1 }
  0x9c   :  { %466 = vmatpush.bf16.msra.mxu1 %v2082_v20  ;;  %v2225_v20 = vld [vmem:[#allocation5 + $0x40] sm:$0xf]  ;;  %v2971_v31 = vor.u32 %v2468_v25, %v2283_v26 }
  0x9d   :  { %966 = vmatpush.bf16.msra.mxu0 %v2911_v23  ;;  %v2933_v46 = vor.u32 %v2457_v43, %v2225_v20  ;;  %v2460_v20 = vld [vmem:[#allocation5 + $0x6c] sm:$0xf]  ;;  %v2251_v43 = vld [vmem:[#allocation5 + $0x78] sm:$0xf0] }
  0x9f   :  { %525 = vmatpush.bf16.msra.mxu3 %v2074_v58 }
  0xa0   :  { %467 = vmatpush.bf16.msra.mxu1 %v2066_v53  ;;  %v2943_v53 = vor.u32 %v2466_v52, %v2265_v51  ;;  %v2452_v51 = vld [vmem:[#allocation5 + $0x2c] sm:$0xf]  ;;  %v2219_v52 = vld [vmem:[#allocation5 + $0x38] sm:$0xf0] }
  0xa1   :  { %967 = vmatpush.bf16.msra.mxu0 %v2921_v33 }
  0xa3   :  { %837 = vmatpush.bf16.msrb.mxu3 %v2911_v23 }
  0xa4   :  { %2058 = vmatmul.msk.bf16.gmra.mxu0 %vm2057_vm5, %v2749_v22  ;;  %811 = vmatpush.bf16.msrb.mxu1 %v2895_v4 }
  0xa7   :  { %838 = vmatpush.bf16.msrb.mxu3 %v2921_v33 }
  0xa8   :  { %812 = vmatpush.bf16.msrb.mxu1 %v2901_v10 }
  0xac   :  { %813 = vmatpush.bf16.msrb.mxu1 %v2907_v16 }
  0xb0   :  { %814 = vmatpush.bf16.msrb.mxu1 %v2915_v28 }
  0xb4   :  { %2060 = vmatmul.msk.bf16.gmra.mxu0 %vm2059_vm8, %v2749_v22  ;;  %815 = vmatpush.bf16.msrb.mxu1 %v2927_v39 }
  0xb8   :  { %816 = vmatpush.bf16.msrb.mxu1 %v2933_v46 }
  0xbc   :  { %817 = vmatpush.bf16.msrb.mxu1 %v2941_v50 }
  0xc4   :  { %2062 = vmatmul.msk.bf16.gmra.mxu0 %vm2061_vm11, %v2749_v22  ;;  %v2083_v22 = vld [vmem:[#allocation3 + $0x30] sm:$0xf0] }
  0xc5   :  { %v2086_v45 = vor.u32 %v2419_v42, %v2083_v22  ;;  %v2470_v42 = vld [vmem:[#allocation5 + $0xb4] sm:$0xf0] }
  0xc6   :  { %v2931_v22 = vor.u32 %v2470_v42, %v2281_v41 }
  0xc7   :  { %495 = vmatpush.bf16.msra.mxu2 %v2086_v45  ;;  %v2227_v45 = vld [vmem:[#allocation5 + $0x50] sm:$0xf0] }
  0xc8   :  { %v2935_v47 = vor.u32 %v2455_v44, %v2227_v45  ;;  %839 = vmatpush.bf16.msrb.mxu3 %v2931_v22  ;;  %968 = vmatpush.bf16.msra.mxu0 %v2931_v22  ;;  %v2987_v44 = vor.u32 %v2460_v20, %v2251_v43  ;;  %v2456_v45 = vld [vmem:[#allocation5 + $0x4c] sm:$0xf] }
  0xc9   :  { %v2992_v49 = vor.u32 %v2456_v45, %v2235_v48 }
  0xcb   :  { %496 = vmatpush.bf16.msra.mxu2 %v2070_v57  ;;  %v2449_v57 = vld [vmem:[#allocation5 + $0xc] sm:$0xf0] }
  0xcc   :  { %840 = vmatpush.bf16.msrb.mxu3 %v2943_v53  ;;  %969 = vmatpush.bf16.msra.mxu0 %v2943_v53  ;;  %v2948_v58 = vor.u32 %v2449_v57, %v2193_v56  ;;  %v2448_v56 = vld [vmem:[#allocation5 + $0xc] sm:$0xf]  ;;  %v2203_v57 = vld [vmem:[#allocation5 + $0x18] sm:$0xf0] }
  0xcd   :  { %v3004_v59 = vor.u32 %v2448_v56, %v2203_v57 }
  0xce   :  { %818 = vmatpush.bf16.msrb.mxu1 %v2948_v58 }
  0xcf   :  { %824 = vmatpush.bf16.msrb.mxu2 %v2893_v2 }
  0xd0   :  { %841 = vmatpush.bf16.msrb.mxu3 %v2950_v62  ;;  %970 = vmatpush.bf16.msra.mxu0 %v2950_v62 }
  0xd3   :  { %825 = vmatpush.bf16.msrb.mxu2 %v2899_v8 }
  0xd4   :  { %842 = vmatpush.bf16.msrb.mxu3 %v2959_v13  ;;  %971 = vmatpush.bf16.msra.mxu0 %v2959_v13 }
  0xd7   :  { %826 = vmatpush.bf16.msrb.mxu2 %v2905_v14 }
  0xdb   :  { %827 = vmatpush.bf16.msrb.mxu2 %v2913_v27 }
  0xdf   :  { %828 = vmatpush.bf16.msrb.mxu2 %v2924_v37 }
  0xe3   :  { %829 = vmatpush.bf16.msrb.mxu2 %v2935_v47 }
  0xe7   :  { %830 = vmatpush.bf16.msrb.mxu2 %v2955_v7 }
 0x111   :  { %v234_v17 = vpop.f32.mrf.mxu0 }
 0x119   :  { %v236_v29 = vpop.f32.mrf.mxu0 }
 0x11a   :  { %v254_v30 = vpack.c.bf16 %v236_v29, %v234_v17  ;;  %v2447_v17 = vld [vmem:[#allocation5 + $0x4] sm:$0xf] }
 0x11b   :  { %v2965_v21 = vor.u32 %v2447_v17, %v2195_v18 }
 0x11c   :  { %468 = vmatmul.bf16.vlgmr.msra.gmra.mxu1 %v254_v30  ;;  %497 = vmatmul.bf16.vlgmr.msra.gmra.mxu2 %v254_v30 }
 0x11d   :  { %526 = vmatmul.bf16.vlgmr.msra.gmra.mxu3 %v254_v30  ;;  %555 = vmatmul.bf16.vlgmr.msrb.gmra.mxu0 %v254_v30  ;;  %v2968_v30 = vor.u32 %v2454_v24, %v2217_v19  ;;  %v3073_v19 = vperm.slane %v290_v1, 0 }
 0x11e   :  { %850 = vmatpush.bf16.msra.mxu1 %v2952_v5  ;;  %831 = vmatpush.bf16.msrb.mxu2 %v2965_v21 }
 0x11f   :  { %843 = vmatpush.bf16.msrb.mxu3 %v2968_v30  ;;  %972 = vmatpush.bf16.msra.mxu0 %v2968_v30 }
 0x121   :  { %v239_v40 = vpop.f32.mrf.mxu0 }
 0x122   :  { %851 = vmatpush.bf16.msra.mxu1 %v2961_v15  ;;  %940 = vmatpush.bf16.msra.mxu2 %v2895_v4 }
 0x123   :  { %844 = vmatpush.bf16.msrb.mxu3 %v2977_v38  ;;  %973 = vmatpush.bf16.msra.mxu0 %v2977_v38 }
 0x126   :  { %852 = vmatpush.bf16.msra.mxu1 %v2971_v31  ;;  %941 = vmatpush.bf16.msra.mxu2 %v2901_v10 }
 0x127   :  { %953 = vmatpush.bf16.msra.mxu3 %v2893_v2  ;;  %1095 = vmatpush.bf16.msrb.mxu0 %v2911_v23 }
 0x129   :  { %v241_v54 = vpop.f32.mrf.mxu0 }
 0x12a   :  { %v255_v55 = vpack.c.bf16 %v241_v54, %v239_v40  ;;  %v2980_v40 = vor.u32 %v2464_v35, %v2267_v36  ;;  %942 = vmatpush.bf16.msra.mxu2 %v2907_v16  ;;  %v3085_v35 = vperm.slane %v290_v1, 2 }
 0x12b   :  { %954 = vmatpush.bf16.msra.mxu3 %v2899_v8  ;;  %1096 = vmatpush.bf16.msrb.mxu0 %v2921_v33 }
 0x12c   :  { %473 = vmatmul.bf16.gmra.mxu1 %v255_v55  ;;  %502 = vmatmul.bf16.gmra.mxu2 %v255_v55 }
 0x12d   :  { %531 = vmatmul.bf16.gmra.mxu3 %v255_v55  ;;  %560 = vmatmul.bf16.gmra.mxu0 %v255_v55  ;;  %v2998_v55 = vor.u32 %v2452_v51, %v2219_v52 }
 0x12e   :  { %853 = vmatpush.bf16.msra.mxu1 %v2980_v40  ;;  %943 = vmatpush.bf16.msra.mxu2 %v2915_v28 }
 0x12f   :  { %955 = vmatpush.bf16.msra.mxu3 %v2905_v14  ;;  %1097 = vmatpush.bf16.msrb.mxu0 %v2931_v22 }
 0x131   :  { %v244_v29 = vpop.f32.mrf.mxu0 }
 0x132   :  { %854 = vmatpush.bf16.msra.mxu1 %v2987_v44  ;;  %944 = vmatpush.bf16.msra.mxu2 %v2927_v39 }
 0x133   :  { %956 = vmatpush.bf16.msra.mxu3 %v2913_v27  ;;  %1098 = vmatpush.bf16.msrb.mxu0 %v2943_v53 }
 0x136   :  { %855 = vmatpush.bf16.msra.mxu1 %v2992_v49  ;;  %945 = vmatpush.bf16.msra.mxu2 %v2933_v46 }
 0x137   :  { %957 = vmatpush.bf16.msra.mxu3 %v2924_v37  ;;  %1099 = vmatpush.bf16.msrb.mxu0 %v2950_v62 }
 0x139   :  { %v246_v41 = vpop.f32.mrf.mxu0 }
 0x13a   :  { %v256_v42 = vpack.c.bf16 %v246_v41, %v244_v29  ;;  %856 = vmatpush.bf16.msra.mxu1 %v2998_v55  ;;  %946 = vmatpush.bf16.msra.mxu2 %v2941_v50 }
 0x13b   :  { %958 = vmatpush.bf16.msra.mxu3 %v2935_v47  ;;  %1100 = vmatpush.bf16.msrb.mxu0 %v2959_v13 }
 0x13c   :  { %478 = vmatmul.bf16.gmra.mxu1 %v256_v42  ;;  %507 = vmatmul.bf16.gmra.mxu2 %v256_v42 }
 0x13d   :  { %536 = vmatmul.bf16.gmra.mxu3 %v256_v42  ;;  %565 = vmatmul.bf16.gmra.mxu0 %v256_v42 }
 0x13e   :  { %857 = vmatpush.bf16.msra.mxu1 %v3004_v59  ;;  %947 = vmatpush.bf16.msra.mxu2 %v2948_v58 }
 0x13f   :  { %959 = vmatpush.bf16.msra.mxu3 %v2955_v7  ;;  %1101 = vmatpush.bf16.msrb.mxu0 %v2968_v30 }
 0x141   :  { %v249_v54 = vpop.f32.mrf.mxu0 }
 0x143   :  { %960 = vmatpush.bf16.msra.mxu3 %v2965_v21  ;;  %1102 = vmatpush.bf16.msrb.mxu0 %v2977_v38 }
 0x149   :  { %v251_v60 = vpop.f32.mrf.mxu0 }
 0x14a   :  { %v257_v61 = vpack.c.bf16 %v251_v60, %v249_v54 }
 0x14c   :  { %483 = vmatmul.bf16.gmra.mxu1 %v257_v61  ;;  %512 = vmatmul.bf16.gmra.mxu2 %v257_v61 }
 0x14d   :  { %541 = vmatmul.bf16.gmra.mxu3 %v257_v61  ;;  %570 = vmatmul.bf16.gmra.mxu0 %v257_v61 }
 0x15c   :  { %819 = vmatmul.bf16.vlgmr.msrb.gmra.mxu1 %v2748_v0  ;;  %832 = vmatmul.bf16.vlgmr.msrb.gmra.mxu2 %v2748_v0 }
 0x15d   :  { %845 = vmatmul.bf16.vlgmr.msrb.gmra.mxu3 %v2748_v0  ;;  %979 = vmatpush.bf16.msrb.mxu1 %v2952_v5 }
 0x15e   :  { %1069 = vmatpush.bf16.msrb.mxu2 %v2895_v4  ;;  %1082 = vmatpush.bf16.msrb.mxu3 %v2893_v2 }
 0x161   :  { %980 = vmatpush.bf16.msrb.mxu1 %v2961_v15 }
 0x162   :  { %1070 = vmatpush.bf16.msrb.mxu2 %v2901_v10  ;;  %1083 = vmatpush.bf16.msrb.mxu3 %v2899_v8 }
 0x165   :  { %981 = vmatpush.bf16.msrb.mxu1 %v2971_v31 }
 0x166   :  { %1071 = vmatpush.bf16.msrb.mxu2 %v2907_v16  ;;  %1084 = vmatpush.bf16.msrb.mxu3 %v2905_v14 }
 0x169   :  { %982 = vmatpush.bf16.msrb.mxu1 %v2980_v40 }
 0x16a   :  { %1072 = vmatpush.bf16.msrb.mxu2 %v2915_v28  ;;  %1085 = vmatpush.bf16.msrb.mxu3 %v2913_v27 }
 0x16c   :  { %858 = vmatmul.bf16.vlgmr.msra.gmra.mxu1 %v2748_v0 }
 0x16d   :  { %983 = vmatpush.bf16.msrb.mxu1 %v2987_v44 }
 0x16e   :  { %1073 = vmatpush.bf16.msrb.mxu2 %v2927_v39  ;;  %1086 = vmatpush.bf16.msrb.mxu3 %v2924_v37 }
 0x171   :  { %984 = vmatpush.bf16.msrb.mxu1 %v2992_v49 }
 0x172   :  { %1074 = vmatpush.bf16.msrb.mxu2 %v2933_v46  ;;  %1087 = vmatpush.bf16.msrb.mxu3 %v2935_v47 }
 0x175   :  { %985 = vmatpush.bf16.msrb.mxu1 %v2998_v55 }
 0x176   :  { %1075 = vmatpush.bf16.msrb.mxu2 %v2941_v50  ;;  %1088 = vmatpush.bf16.msrb.mxu3 %v2955_v7 }
 0x179   :  { %986 = vmatpush.bf16.msrb.mxu1 %v3004_v59 }
 0x17a   :  { %1076 = vmatpush.bf16.msrb.mxu2 %v2948_v58  ;;  %1089 = vmatpush.bf16.msrb.mxu3 %v2965_v21 }
 0x17d   :  { %1108 = vmatpush.bf16.msra.mxu1 %v2952_v5 }
 0x181   :  { %1109 = vmatpush.bf16.msra.mxu1 %v2961_v15 }
 0x185   :  { %1110 = vmatpush.bf16.msra.mxu1 %v2971_v31 }
 0x189   :  { %1111 = vmatpush.bf16.msra.mxu1 %v2980_v40 }
 0x18d   :  { %1112 = vmatpush.bf16.msra.mxu1 %v2987_v44 }
 0x191   :  { %1113 = vmatpush.bf16.msra.mxu1 %v2992_v49 }
 0x195   :  { %1114 = vmatpush.bf16.msra.mxu1 %v2998_v55 }
 0x199   :  { %1115 = vmatpush.bf16.msra.mxu1 %v3004_v59  ;;  %v469_v0 = vpop.f32.mrf.mxu1 }
 0x19a   :  { %v3057_v63 = vpop.f32.mrf.mxu0 }
 0x19f   :  { %v498_v3 = vpop.f32.mrf.mxu2 }
 0x1a0   :  { %v3062_v6 = vpop.f32.mrf.mxu3 }
 0x1a1   :  { %v3066_v11 = vpop.f32.mrf.mxu1 }
 0x1a2   :  { %v558_v12 = vpop.f32.mrf.mxu0 }
 0x1a3   :  { %v3069_v17 = vadd.f32 %v558_v12, %v3064_v9 }
 0x1a7   :  { %v3071_v18 = vpop.f32.mrf.mxu2 }
 0x1a8   :  { %v3075_v24 = vpop.f32.mrf.mxu3 }
 0x1a9   :  { %v474_v25 = vpop.f32.mrf.mxu1 }
 0x1aa   :  { %v3078_v26 = vadd.f32 %v474_v25, %v3073_v19  ;;  %v561_v29 = vpop.f32.mrf.mxu0 }
 0x1ab   :  { %v3081_v32 = vadd.f32 %v561_v29, %v3064_v9 }
 0x1af   :  { %v503_v36 = vpop.f32.mrf.mxu2 }
 0x1b0   :  { %v3088_v41 = vadd.f32 %v503_v36, %v3083_v34  ;;  %v532_v42 = vpop.f32.mrf.mxu3 }
 0x1b1   :  { %v3091_v20 = vadd.f32 %v532_v42, %v3085_v35  ;;  %v476_v43 = vpop.f32.mrf.mxu1 }
 0x1b2   :  { %v3094_v45 = vadd.f32 %v476_v43, %v3073_v19  ;;  %v563_v48 = vpop.f32.mrf.mxu0 }
 0x1b3   :  { %3440 = vst [vmem:[#allocation14_spill] sm:$0xff] %v3091_v20  ;;  %v3097_v51 = vadd.f32 %v563_v48, %v3064_v9 }
 0x1b4   :  { %3441 = vst [vmem:[#allocation15_spill] sm:$0xff] %v3094_v45 }
 0x1b5   :  { %3442 = vst [vmem:[#allocation16_spill] sm:$0xff] %v3097_v51 }
 0x1b7   :  { %v505_v52 = vpop.f32.mrf.mxu2 }
 0x1b8   :  { %v3100_v54 = vadd.f32 %v505_v52, %v3083_v34  ;;  %v534_v56 = vpop.f32.mrf.mxu3 }
 0x1b9   :  { %v3103_v57 = vadd.f32 %v534_v56, %v3085_v35  ;;  %v479_v60 = vpop.f32.mrf.mxu1 }
 0x1ba   :  { %3443 = vst [vmem:[#allocation17_spill] sm:$0xff] %v3100_v54  ;;  %v3106_v61 = vadd.f32 %v479_v60, %v3073_v19  ;;  %v566_v1 = vpop.f32.mrf.mxu0 }
 0x1bb   :  { %3444 = vst [vmem:[#allocation18_spill] sm:$0xff] %v3103_v57  ;;  %v3109_v12 = vadd.f32 %v566_v1, %v3064_v9 }
 0x1bc   :  { %3445 = vst [vmem:[#allocation19_spill] sm:$0xff] %v3106_v61 }
 0x1bd   :  { %3446 = vst [vmem:[#allocation20_spill] sm:$0xff] %v3109_v12 }
 0x1bf   :  { %v508_v25 = vpop.f32.mrf.mxu2 }
 0x1c0   :  { %v3112_v29 = vadd.f32 %v508_v25, %v3083_v34  ;;  %v537_v36 = vpop.f32.mrf.mxu3 }
 0x1c1   :  { %v3115_v42 = vadd.f32 %v537_v36, %v3085_v35  ;;  %v481_v43 = vpop.f32.mrf.mxu1 }
 0x1c2   :  { %3447 = vst [vmem:[#allocation21_spill] sm:$0xff] %v3112_v29  ;;  %v3118_v48 = vadd.f32 %v481_v43, %v3073_v19  ;;  %v568_v52 = vpop.f32.mrf.mxu0 }
 0x1c3   :  { %3448 = vst [vmem:[#allocation22_spill] sm:$0xff] %v3115_v42  ;;  %v3121_v56 = vadd.f32 %v568_v52, %v3064_v9 }
 0x1c4   :  { %3449 = vst [vmem:[#allocation23_spill] sm:$0xff] %v3118_v48 }
 0x1c5   :  { %3450 = vst [vmem:[#allocation24_spill] sm:$0xff] %v3121_v56 }
 0x1c7   :  { %v510_v60 = vpop.f32.mrf.mxu2 }
 0x1c8   :  { %v3124_v1 = vadd.f32 %v510_v60, %v3083_v34  ;;  %v539_v61 = vpop.f32.mrf.mxu3 }
 0x1c9   :  { %v3127_v25 = vadd.f32 %v539_v61, %v3085_v35  ;;  %v484_v29 = vpop.f32.mrf.mxu1 }
 0x1ca   :  { %3451 = vst [vmem:[#allocation25_spill] sm:$0xff] %v3124_v1  ;;  %v3130_v36 = vadd.f32 %v484_v29, %v3073_v19  ;;  %v571_v42 = vpop.f32.mrf.mxu0  ;;  %v470_v29 = vadd.f32 %v469_v0, %v3073_v19 }
 0x1cb   :  { %3452 = vst [vmem:[#allocation26_spill] sm:$0xff] %v3127_v25  ;;  %v3133_v43 = vadd.f32 %v571_v42, %v3064_v9 }
 0x1cc   :  { %3453 = vst [vmem:[#allocation27_spill] sm:$0xff] %v3130_v36 }
 0x1cd   :  { %3454 = vst [vmem:[#allocation28_spill] sm:$0xff] %v3133_v43 }
 0x1cf   :  { %v513_v48 = vpop.f32.mrf.mxu2 }
 0x1d0   :  { %v3136_v52 = vadd.f32 %v513_v48, %v3083_v34  ;;  %v542_v56 = vpop.f32.mrf.mxu3 }
 0x1d1   :  { %v3139_v60 = vadd.f32 %v542_v56, %v3085_v35  ;;  %v486_v1 = vpop.f32.mrf.mxu1  ;;  %v499_v56 = vadd.f32 %v498_v3, %v3083_v34  ;;  %v528_v3 = vadd.f32 %v3062_v6, %v3085_v35 }
 0x1d2   :  { %3455 = vst [vmem:[#allocation29_spill] sm:$0xff] %v3136_v52  ;;  %v3142_v61 = vadd.f32 %v486_v1, %v3073_v19 }
 0x1d3   :  { %3456 = vst [vmem:[#allocation30_spill] sm:$0xff] %v3139_v60 }
 0x1d4   :  { %3457 = vst [vmem:[#allocation31_spill] sm:$0xff] %v3142_v61 }
 0x1d7   :  { %v515_v25 = vpop.f32.mrf.mxu2 }
 0x1d8   :  { %v3146_v36 = vadd.f32 %v515_v25, %v3083_v34  ;;  %v544_v42 = vpop.f32.mrf.mxu3 }
 0x1d9   :  { %v3149_v43 = vadd.f32 %v544_v42, %v3085_v35  ;;  %v820_v48 = vpop.f32.mrf.mxu1  ;;  %v557_v42 = vadd.f32 %v3057_v63, %v3064_v9 }
 0x1da   :  { %3458 = vst [vmem:[#allocation32_spill] sm:$0xff] %v3146_v36  ;;  %v863_v52 = vadd.f32 %v820_v48, %v470_v29 }
 0x1db   :  { %3459 = vst [vmem:[#allocation33_spill] sm:$0xff] %v3149_v43 }
 0x1dc   :  { %v2319_v12 = vmul.f32 -1.442695, %v863_v52 }
 0x1de   :  { %2510 = vpow2.f32 %v2319_v12 }
 0x1df   :  { %v833_v60 = vpop.f32.mrf.mxu2 }
 0x1e0   :  { %v864_v57 = vadd.f32 %v833_v60, %v499_v56  ;;  %v846_v1 = vpop.f32.mrf.mxu3 }
 0x1e1   :  { %v822_v61 = vpop.f32.mrf.mxu1 }
 0x1e2   :  { %v2320_v54 = vmul.f32 -1.442695, %v864_v57  ;;  %v865_v57 = vadd.f32 %v846_v1, %v528_v3 }
 0x1e4   :  { %v2511_v45 = vpop.eup %2510  ;;  %2512 = vpow2.f32 %v2320_v54 }
 0x1e5   :  { %v870_v0 = vadd.f32 1.0, %v2511_v45 }
 0x1e7   :  { %2514 = vrcp.f32 %v870_v0  ;;  %v835_v25 = vpop.f32.mrf.mxu2  ;;  %v882_v54 = vand.u32 2147483648, %v870_v0  ;;  %v880_v63 = vand.u32 2147483647, %v870_v0  ;;  %vm876_vm13 = vweird.f32 %v870_v0 }
 0x1e8   :  { %v848_v43 = vpop.f32.mrf.mxu3 }
 0x1e9   :  { %v859_v36 = vpop.f32.mrf.mxu1  ;;  %v883_v6 = vor.u32 1.1754944e-38, %v882_v54  ;;  %vm881_vm15 = vcmp.eq.f32.partialorder %v880_v63, 8.507059e+37 }
 0x1ea   :  { %v2513_v29 = vpop.eup %2512  ;;  %v866_v52 = vadd.f32 %v859_v36, %v557_v42 }
 0x1eb   :  { %v889_v12 = vadd.f32 1.0, %v2513_v29 }
 0x1ec   :  { %v2321_v60 = vmul.f32 -1.442695, %v866_v52 }
 0x1ed   :  { %v2515_v48 = vpop.eup %2514  ;;  %2516 = vrcp.f32 %v889_v12  ;;  %v901_v3 = vand.u32 2147483648, %v889_v12  ;;  %vm895_vm1 = vweird.f32 %v889_v12 }
 0x1ee   :  { %v872_v61 = vmul.f32 %v2515_v48, %v870_v0  ;;  %2518 = vpow2.f32 %v2321_v60  ;;  %vm877_vm12 = vweird.f32 %v2515_v48 }
 0x1ef   :  { %2520 = vtanh.f32 %v865_v57  ;;  %vm878_vm14 = vmor %vm876_vm13, %vm877_vm12  ;;  %v902_v20 = vor.u32 1.1754944e-38, %v901_v3 }
 0x1f0   :  { %v873_v45 = vsub.f32 1.0, %v872_v61  ;;  %v899_v61 = vand.u32 2147483647, %v889_v12 }
 0x1f1   :  { %v861_v56 = vpop.f32.mrf.mxu1 }
 0x1f2   :  { %v874_v25 = vmul.f32 %v2515_v48, %v873_v45  ;;  %vm900_vm3 = vcmp.eq.f32.partialorder %v899_v61, 8.507059e+37 }
 0x1f3   :  { %v2517_v43 = vpop.eup %2516 }
 0x1f4   :  { %v2519_v9 = vpop.eup %2518  ;;  %v891_v36 = vmul.f32 %v2517_v43, %v889_v12  ;;  %v875_v42 = vadd.f32 %v2515_v48, %v874_v25  ;;  %vm896_vm0 = vweird.f32 %v2517_v43 }
 0x1f5   :  { %v909_v29 = vadd.f32 1.0, %v2519_v9  ;;  %v2521_v1 = vpop.eup %2520  ;;  %vm897_vm2 = vmor %vm895_vm1, %vm896_vm0 }
 0x1f6   :  { %v892_v52 = vsub.f32 1.0, %v891_v36  ;;  %v879_v51 = vsel %vm878_vm14, %v2515_v48, %v875_v42 }
 0x1f7   :  { %v884_v60 = vsel %vm881_vm15, %v883_v6, %v879_v51  ;;  %2522 = vrcp.f32 %v909_v29  ;;  %v921_v42 = vand.u32 2147483648, %v909_v29  ;;  %v919_v6 = vand.u32 2147483647, %v909_v29 }
 0x1f8   :  { %v893_v57 = vmul.f32 %v2517_v43, %v892_v52  ;;  %v926_v45 = vmul.f32 %v2521_v1, %v884_v60  ;;  %vm915_vm5 = vweird.f32 %v909_v29 }
 0x1f9   :  { %v922_v52 = vor.u32 1.1754944e-38, %v921_v42  ;;  %vm920_vm7 = vcmp.eq.f32.partialorder %v919_v6, 8.507059e+37 }
 0x1fa   :  { %v894_v56 = vadd.f32 %v2517_v43, %v893_v57 }
 0x1fc   :  { %v898_v25 = vsel %vm897_vm2, %v2517_v43, %v894_v56 }
 0x1fd   :  { %v2523_v0 = vpop.eup %2522  ;;  %v903_v54 = vsel %vm900_vm3, %v902_v20, %v898_v25  ;;  %v472_v25 = vadd.f32 %v3066_v11, %v3073_v19 }
 0x1fe   :  { %v925_v9 = vmul.f32 0.0, %v903_v54  ;;  %v911_v36 = vmul.f32 %v2523_v0, %v909_v29  ;;  %vm916_vm4 = vweird.f32 %v2523_v0  ;;  %v3195_v29 = vpop.f32.mrf.mxu0 }
 0x1ff   :  { %vm917_vm6 = vmor %vm915_vm5, %vm916_vm4 }
 0x200   :  { %v3156_v48 = vadd.f32 %v926_v45, %v925_v9  ;;  %v912_v63 = vsub.f32 1.0, %v911_v36 }
 0x202   :  { %2524 = vtanh.f32 %v3156_v48  ;;  %v913_v51 = vmul.f32 %v2523_v0, %v912_v63 }
 0x204   :  { %v914_v12 = vadd.f32 %v2523_v0, %v913_v51 }
 0x206   :  { %v918_v1 = vsel %vm917_vm6, %v2523_v0, %v914_v12  ;;  %v501_v0 = vadd.f32 %v3071_v18, %v3083_v34  ;;  %v530_v34 = vadd.f32 %v3075_v24, %v3085_v35 }
 0x207   :  { %v923_v43 = vsel %vm920_vm7, %v922_v52, %v918_v1 }
 0x208   :  { %v2525_v3 = vpop.eup %2524 }
 0x209   :  { %v3159_v20 = vmul.f32 %v2525_v3, %v923_v43 }
 0x20b   :  { %v939_v60 = vpack.c.bf16 %v3159_v20, %v3159_v20 }
 0x20d   :  { %948 = vmatmul.bf16.vlgmr.msra.gmra.mxu2 %v939_v60  ;;  %961 = vmatmul.bf16.vlgmr.msra.gmra.mxu3 %v939_v60 }
 0x20e   :  { %974 = vmatmul.bf16.vlgmr.msra.gmra.mxu0 %v939_v60  ;;  %987 = vmatmul.bf16.vlgmr.msrb.gmra.mxu1 %v939_v60 }
 0x20f   :  { %1198 = vmatpush.bf16.msra.mxu2 %v2895_v4  ;;  %1211 = vmatpush.bf16.msra.mxu3 %v2893_v2 }
 0x210   :  { %1224 = vmatpush.bf16.msra.mxu0 %v2911_v23  ;;  %1237 = vmatpush.bf16.msrb.mxu1 %v2952_v5 }
 0x213   :  { %1199 = vmatpush.bf16.msra.mxu2 %v2901_v10  ;;  %1212 = vmatpush.bf16.msra.mxu3 %v2899_v8 }
 0x214   :  { %1225 = vmatpush.bf16.msra.mxu0 %v2921_v33  ;;  %1238 = vmatpush.bf16.msrb.mxu1 %v2961_v15 }
 0x217   :  { %1200 = vmatpush.bf16.msra.mxu2 %v2907_v16  ;;  %1213 = vmatpush.bf16.msra.mxu3 %v2905_v14 }
 0x218   :  { %1226 = vmatpush.bf16.msra.mxu0 %v2931_v22  ;;  %1239 = vmatpush.bf16.msrb.mxu1 %v2971_v31 }
 0x21b   :  { %1201 = vmatpush.bf16.msra.mxu2 %v2915_v28  ;;  %1214 = vmatpush.bf16.msra.mxu3 %v2913_v27 }
 0x21c   :  { %1227 = vmatpush.bf16.msra.mxu0 %v2943_v53  ;;  %1240 = vmatpush.bf16.msrb.mxu1 %v2980_v40 }
 0x21f   :  { %1202 = vmatpush.bf16.msra.mxu2 %v2927_v39  ;;  %1215 = vmatpush.bf16.msra.mxu3 %v2924_v37 }
 0x220   :  { %1228 = vmatpush.bf16.msra.mxu0 %v2950_v62  ;;  %1241 = vmatpush.bf16.msrb.mxu1 %v2987_v44 }
 0x223   :  { %1203 = vmatpush.bf16.msra.mxu2 %v2933_v46  ;;  %1216 = vmatpush.bf16.msra.mxu3 %v2935_v47 }
 0x224   :  { %1229 = vmatpush.bf16.msra.mxu0 %v2959_v13  ;;  %1242 = vmatpush.bf16.msrb.mxu1 %v2992_v49 }
 0x227   :  { %1204 = vmatpush.bf16.msra.mxu2 %v2941_v50  ;;  %1217 = vmatpush.bf16.msra.mxu3 %v2955_v7 }
 0x228   :  { %1230 = vmatpush.bf16.msra.mxu0 %v2968_v30  ;;  %1243 = vmatpush.bf16.msrb.mxu1 %v2998_v55 }
 0x22b   :  { %1205 = vmatpush.bf16.msra.mxu2 %v2948_v58  ;;  %1218 = vmatpush.bf16.msra.mxu3 %v2965_v21 }
 0x22c   :  { %1231 = vmatpush.bf16.msra.mxu0 %v2977_v38  ;;  %1244 = vmatpush.bf16.msrb.mxu1 %v3004_v59 }
 0x28b   :  { %v975_v57 = vpop.f32.mrf.mxu0  ;;  %v988_v61 = vpop.f32.mrf.mxu1 }
 0x28c   :  { %v995_v45 = vadd.f32 %v988_v61, %v3069_v17 }
 0x28e   :  { %v2324_v56 = vmul.f32 -1.442695, %v995_v45  ;;  %v994_v45 = vadd.f32 %v975_v57, %v530_v34 }
 0x290   :  { %2526 = vpow2.f32 %v2324_v56  ;;  %v949_v54 = vpop.f32.mrf.mxu2  ;;  %v962_v9 = vpop.f32.mrf.mxu3 }
 0x291   :  { %v992_v36 = vadd.f32 %v949_v54, %v472_v25  ;;  %v993_v63 = vadd.f32 %v962_v9, %v501_v0 }
 0x293   :  { %v2322_v42 = vmul.f32 -1.442695, %v992_v36  ;;  %v2323_v51 = vmul.f32 -1.442695, %v993_v63  ;;  %v977_v6 = vpop.f32.mrf.mxu0  ;;  %v990_v12 = vpop.f32.mrf.mxu1 }
 0x295   :  { %2528 = vpow2.f32 %v2322_v42 }
 0x296   :  { %v2527_v52 = vpop.eup %2526  ;;  %2530 = vpow2.f32 %v2323_v51 }
 0x297   :  { %v1038_v43 = vadd.f32 1.0, %v2527_v52 }
 0x298   :  { %v951_v17 = vpop.f32.mrf.mxu2  ;;  %v964_v1 = vpop.f32.mrf.mxu3 }
 0x299   :  { %2532 = vrcp.f32 %v1038_v43  ;;  %vm1044_vm1 = vweird.f32 %v1038_v43 }
 0x29b   :  { %v2529_v3 = vpop.eup %2528 }
 0x29c   :  { %v2531_v11 = vpop.eup %2530  ;;  %v999_v19 = vadd.f32 1.0, %v2529_v3 }
 0x29d   :  { %v1018_v18 = vadd.f32 1.0, %v2531_v11 }
 0x29e   :  { %2534 = vrcp.f32 %v999_v19  ;;  %v1011_v36 = vand.u32 2147483648, %v999_v19  ;;  %v1009_v51 = vand.u32 2147483647, %v999_v19  ;;  %vm1005_vm10 = vweird.f32 %v999_v19 }
 0x29f   :  { %2536 = vrcp.f32 %v1018_v18  ;;  %v2533_v60 = vpop.eup %2532  ;;  %v1030_v6 = vand.u32 2147483648, %v1018_v18  ;;  %v1028_v52 = vand.u32 2147483647, %v1018_v18  ;;  %vm1024_vm12 = vweird.f32 %v1018_v18 }
 0x2a0   :  { %v1040_v54 = vmul.f32 %v2533_v60, %v1038_v43  ;;  %2538 = vtanh.f32 %v994_v45  ;;  %v1012_v35 = vor.u32 1.1754944e-38, %v1011_v36  ;;  %vm1010_vm13 = vcmp.eq.f32.partialorder %v1009_v51, 8.507059e+37 }
 0x2a1   :  { %v1031_v3 = vor.u32 1.1754944e-38, %v1030_v6  ;;  %vm1029_vm15 = vcmp.eq.f32.partialorder %v1028_v52, 8.507059e+37  ;;  %vm1045_vm0 = vweird.f32 %v2533_v60  ;;  %v1050_v36 = vand.u32 2147483648, %v1038_v43 }
 0x2a2   :  { %v1041_v17 = vsub.f32 1.0, %v1040_v54  ;;  %vm1046_vm2 = vmor %vm1044_vm1, %vm1045_vm0 }
 0x2a4   :  { %v2535_v61 = vpop.eup %2534 }
 0x2a5   :  { %v2537_v56 = vpop.eup %2536  ;;  %v1001_v25 = vmul.f32 %v2535_v61, %v999_v19  ;;  %vm1006_vm8 = vweird.f32 %v2535_v61 }
 0x2a6   :  { %v1020_v0 = vmul.f32 %v2537_v56, %v1018_v18  ;;  %vm1025_vm9 = vweird.f32 %v2537_v56  ;;  %vm1007_vm11 = vmor %vm1005_vm10, %vm1006_vm8  ;;  %v2539_v11 = vpop.eup %2538  ;;  %v1048_v18 = vand.u32 2147483647, %v1038_v43 }
 0x2a7   :  { %v1002_v9 = vsub.f32 1.0, %v1001_v25  ;;  %vm1026_vm14 = vmor %vm1024_vm12, %vm1025_vm9  ;;  %v1042_v25 = vmul.f32 %v2533_v60, %v1041_v17 }
 0x2a8   :  { %v1021_v63 = vsub.f32 1.0, %v1020_v0  ;;  %vm1049_vm3 = vcmp.eq.f32.partialorder %v1048_v18, 8.507059e+37 }
 0x2a9   :  { %v1003_v42 = vmul.f32 %v2535_v61, %v1002_v9  ;;  %v1043_v19 = vadd.f32 %v2533_v60, %v1042_v25 }
 0x2aa   :  { %v1022_v12 = vmul.f32 %v2537_v56, %v1021_v63 }
 0x2ab   :  { %v1004_v24 = vadd.f32 %v2535_v61, %v1003_v42  ;;  %v3208_v42 = vpop.permute.xlu2 %610 }
 0x2ac   :  { %v1023_v57 = vadd.f32 %v2537_v56, %v1022_v12  ;;  %vm930_vm4 = vcmp.eq.s32.totalorder %v3208_v42, 1  ;;  %vm1059_vm5 = vcmp.eq.s32.totalorder %v3208_v42, 2 }
 0x2ad   :  { %v1008_v1 = vsel %vm1007_vm11, %v2535_v61, %v1004_v24  ;;  %v1047_v61 = vsel %vm1046_vm2, %v2533_v60, %v1043_v19  ;;  %v931_v12 = vsel %vm930_vm4, %v3159_v20, 0.0  ;;  %vm1188_vm2 = vcmp.eq.s32.totalorder %v3208_v42, 3 }
 0x2ae   :  { %v1013_v34 = vsel %vm1010_vm13, %v1012_v35, %v1008_v1  ;;  %v1027_v45 = vsel %vm1026_vm14, %v2537_v56, %v1023_v57  ;;  %v1051_v56 = vor.u32 1.1754944e-38, %v1050_v36 }
 0x2af   :  { %v1055_v0 = vmul.f32 %v2539_v11, %v1013_v34  ;;  %v1032_v9 = vsel %vm1029_vm15, %v1031_v3, %v1027_v45 }
 0x2b0   :  { %v1054_v63 = vmul.f32 %v1032_v9, %v3156_v48  ;;  %v1052_v6 = vsel %vm1049_vm3, %v1051_v56, %v1047_v61 }
 0x2b2   :  { %v3205_v54 = vadd.f32 %v1055_v0, %v1054_v63 }
 0x2b4   :  { %2540 = vtanh.f32 %v3205_v54 }
 0x2ba   :  { %v2541_v51 = vpop.eup %2540 }
 0x2bb   :  { %v1058_v48 = vmul.f32 %v2541_v51, %v1052_v6 }
 0x2bd   :  { %v3213_v52 = vsel %vm1059_vm5, %v1058_v48, %v931_v12  ;;  %v1068_v17 = vpack.c.bf16 %v1058_v48, %v1058_v48 }
 0x2bf   :  { %1077 = vmatmul.bf16.vlgmr.msrb.gmra.mxu2 %v1068_v17  ;;  %1090 = vmatmul.bf16.vlgmr.msrb.gmra.mxu3 %v1068_v17 }
 0x2c0   :  { %1103 = vmatmul.bf16.vlgmr.msrb.gmra.mxu0 %v1068_v17  ;;  %1116 = vmatmul.bf16.vlgmr.msra.gmra.mxu1 %v1068_v17 }
 0x2c1   :  { %1327 = vmatpush.bf16.msrb.mxu2 %v2895_v4  ;;  %1340 = vmatpush.bf16.msrb.mxu3 %v2893_v2 }
 0x2c2   :  { %1353 = vmatpush.bf16.msrb.mxu0 %v2911_v23  ;;  %1366 = vmatpush.bf16.msra.mxu1 %v2952_v5 }
 0x2c5   :  { %1328 = vmatpush.bf16.msrb.mxu2 %v2901_v10  ;;  %1341 = vmatpush.bf16.msrb.mxu3 %v2899_v8 }
 0x2c6   :  { %1354 = vmatpush.bf16.msrb.mxu0 %v2921_v33  ;;  %1367 = vmatpush.bf16.msra.mxu1 %v2961_v15 }
 0x2c9   :  { %1329 = vmatpush.bf16.msrb.mxu2 %v2907_v16  ;;  %1342 = vmatpush.bf16.msrb.mxu3 %v2905_v14 }
 0x2ca   :  { %1355 = vmatpush.bf16.msrb.mxu0 %v2931_v22  ;;  %1368 = vmatpush.bf16.msra.mxu1 %v2971_v31 }
 0x2cd   :  { %1330 = vmatpush.bf16.msrb.mxu2 %v2915_v28  ;;  %1343 = vmatpush.bf16.msrb.mxu3 %v2913_v27 }
 0x2ce   :  { %1356 = vmatpush.bf16.msrb.mxu0 %v2943_v53  ;;  %1369 = vmatpush.bf16.msra.mxu1 %v2980_v40 }
 0x2d1   :  { %1331 = vmatpush.bf16.msrb.mxu2 %v2927_v39  ;;  %1344 = vmatpush.bf16.msrb.mxu3 %v2924_v37 }
 0x2d2   :  { %1357 = vmatpush.bf16.msrb.mxu0 %v2950_v62  ;;  %1370 = vmatpush.bf16.msra.mxu1 %v2987_v44 }
 0x2d5   :  { %1332 = vmatpush.bf16.msrb.mxu2 %v2933_v46  ;;  %1345 = vmatpush.bf16.msrb.mxu3 %v2935_v47 }
 0x2d6   :  { %1358 = vmatpush.bf16.msrb.mxu0 %v2959_v13  ;;  %1371 = vmatpush.bf16.msra.mxu1 %v2992_v49 }
 0x2d9   :  { %1333 = vmatpush.bf16.msrb.mxu2 %v2941_v50  ;;  %1346 = vmatpush.bf16.msrb.mxu3 %v2955_v7 }
 0x2da   :  { %1359 = vmatpush.bf16.msrb.mxu0 %v2968_v30  ;;  %1372 = vmatpush.bf16.msra.mxu1 %v2998_v55 }
 0x2dd   :  { %1334 = vmatpush.bf16.msrb.mxu2 %v2948_v58  ;;  %1347 = vmatpush.bf16.msrb.mxu3 %v2965_v21 }
 0x2de   :  { %1360 = vmatpush.bf16.msrb.mxu0 %v2977_v38  ;;  %1373 = vmatpush.bf16.msra.mxu1 %v3004_v59 }
 0x33d   :  { %v1104_v20 = vpop.f32.mrf.mxu0  ;;  %v1117_v43 = vpop.f32.mrf.mxu1 }
 0x33e   :  { %v1124_v60 = vadd.f32 %v1117_v43, %v3081_v32 }
 0x340   :  { %v2327_v24 = vmul.f32 -1.442695, %v1124_v60 }
 0x342   :  { %2542 = vpow2.f32 %v2327_v24  ;;  %v1078_v35 = vpop.f32.mrf.mxu2  ;;  %v1091_v57 = vpop.f32.mrf.mxu3 }
 0x343   :  { %v1121_v1 = vadd.f32 %v1078_v35, %v3078_v26  ;;  %v1122_v3 = vadd.f32 %v1091_v57, %v3088_v41  ;;  %v3460_v41 = vld [vmem:[#allocation14_spill] sm:$0xff] }
 0x344   :  { %v1123_v51 = vadd.f32 %v1104_v20, %v3460_v41 }
 0x345   :  { %v2325_v11 = vmul.f32 -1.442695, %v1121_v1  ;;  %v2326_v34 = vmul.f32 -1.442695, %v1122_v3  ;;  %v1106_v45 = vpop.f32.mrf.mxu0  ;;  %v1119_v25 = vpop.f32.mrf.mxu1 }
 0x347   :  { %2544 = vpow2.f32 %v2325_v11 }
 0x348   :  { %v2543_v0 = vpop.eup %2542  ;;  %2546 = vpow2.f32 %v2326_v34 }
 0x349   :  { %v1167_v19 = vadd.f32 1.0, %v2543_v0 }
 0x34a   :  { %v1080_v9 = vpop.f32.mrf.mxu2  ;;  %v1093_v63 = vpop.f32.mrf.mxu3 }
 0x34b   :  { %2548 = vrcp.f32 %v1167_v19  ;;  %vm1173_vm15 = vweird.f32 %v1167_v19 }
 0x34d   :  { %v2545_v36 = vpop.eup %2544 }
 0x34e   :  { %v2547_v32 = vpop.eup %2546  ;;  %v1128_v18 = vadd.f32 1.0, %v2545_v36 }
 0x34f   :  { %v1147_v61 = vadd.f32 1.0, %v2547_v32 }
 0x350   :  { %2550 = vrcp.f32 %v1128_v18  ;;  %v1140_v60 = vand.u32 2147483648, %v1128_v18  ;;  %v1138_v57 = vand.u32 2147483647, %v1128_v18  ;;  %vm1134_vm8 = vweird.f32 %v1128_v18 }
 0x351   :  { %2552 = vrcp.f32 %v1147_v61  ;;  %v2549_v26 = vpop.eup %2548  ;;  %v1159_v1 = vand.u32 2147483648, %v1147_v61  ;;  %v1157_v11 = vand.u32 2147483647, %v1147_v61  ;;  %vm1153_vm10 = vweird.f32 %v1147_v61 }
 0x352   :  { %v1169_v17 = vmul.f32 %v2549_v26, %v1167_v19  ;;  %2554 = vtanh.f32 %v1123_v51  ;;  %v1141_v20 = vor.u32 1.1754944e-38, %v1140_v60  ;;  %vm1139_vm11 = vcmp.eq.f32.partialorder %v1138_v57, 8.507059e+37 }
 0x353   :  { %v1160_v9 = vor.u32 1.1754944e-38, %v1159_v1  ;;  %vm1158_vm13 = vcmp.eq.f32.partialorder %v1157_v11, 8.507059e+37  ;;  %vm1174_vm14 = vweird.f32 %v2549_v26 }
 0x354   :  { %v1170_v34 = vsub.f32 1.0, %v1169_v17  ;;  %vm1175_vm0 = vmor %vm1173_vm15, %vm1174_vm14  ;;  %vm1317_vm15 = vcmp.eq.s32.totalorder %v3208_v42, 4 }
 0x356   :  { %v2551_v56 = vpop.eup %2550  ;;  %v1171_v41 = vmul.f32 %v2549_v26, %v1170_v34 }
 0x357   :  { %v2553_v6 = vpop.eup %2552  ;;  %v1130_v48 = vmul.f32 %v2551_v56, %v1128_v18  ;;  %vm1135_vm6 = vweird.f32 %v2551_v56 }
 0x358   :  { %v1149_v12 = vmul.f32 %v2553_v6, %v1147_v61  ;;  %vm1154_vm7 = vweird.f32 %v2553_v6  ;;  %vm1136_vm9 = vmor %vm1134_vm8, %vm1135_vm6  ;;  %v2555_v63 = vpop.eup %2554  ;;  %v1172_v18 = vadd.f32 %v2549_v26, %v1171_v41  ;;  %v1177_v61 = vand.u32 2147483647, %v1167_v19 }
 0x359   :  { %v1131_v43 = vsub.f32 1.0, %v1130_v48  ;;  %vm1155_vm12 = vmor %vm1153_vm10, %vm1154_vm7 }
 0x35a   :  { %v1150_v24 = vsub.f32 1.0, %v1149_v12  ;;  %vm1178_vm1 = vcmp.eq.f32.partialorder %v1177_v61, 8.507059e+37 }
 0x35b   :  { %v1132_v35 = vmul.f32 %v2551_v56, %v1131_v43  ;;  %v1179_v43 = vand.u32 2147483648, %v1167_v19 }
 0x35c   :  { %v1151_v3 = vmul.f32 %v2553_v6, %v1150_v24 }
 0x35d   :  { %v1133_v45 = vadd.f32 %v2551_v56, %v1132_v35  ;;  %v1180_v60 = vor.u32 1.1754944e-38, %v1179_v43 }
 0x35e   :  { %v1152_v25 = vadd.f32 %v2553_v6, %v1151_v3 }
 0x35f   :  { %v1137_v0 = vsel %vm1136_vm9, %v2551_v56, %v1133_v45  ;;  %v1176_v56 = vsel %vm1175_vm0, %v2549_v26, %v1172_v18  ;;  %v3461_v26 = vld [vmem:[#allocation16_spill] sm:$0xff]  ;;  %v3462_v45 = vld [vmem:[#allocation15_spill] sm:$0xff] }
 0x360   :  { %v1142_v36 = vsel %vm1139_vm11, %v1141_v20, %v1137_v0  ;;  %v1156_v32 = vsel %vm1155_vm12, %v2553_v6, %v1152_v25  ;;  %v1181_v24 = vsel %vm1178_vm1, %v1180_v60, %v1176_v56  ;;  %v3463_v25 = vld [vmem:[#allocation17_spill] sm:$0xff] }
 0x361   :  { %v1184_v51 = vmul.f32 %v2555_v63, %v1142_v36  ;;  %v1161_v48 = vsel %vm1158_vm13, %v1160_v9, %v1156_v32 }
 0x362   :  { %v1183_v12 = vmul.f32 %v1161_v48, %v3205_v54 }
 0x364   :  { %v3252_v17 = vadd.f32 %v1184_v51, %v1183_v12 }
 0x366   :  { %2556 = vtanh.f32 %v3252_v17 }
 0x36c   :  { %v2557_v6 = vpop.eup %2556 }
 0x36d   :  { %v1187_v35 = vmul.f32 %v2557_v6, %v1181_v24  ;;  %v3464_v24 = vld [vmem:[#allocation18_spill] sm:$0xff] }
 0x36f   :  { %v3257_v54 = vsel %vm1188_vm2, %v1187_v35, %v3213_v52  ;;  %v1197_v57 = vpack.c.bf16 %v1187_v35, %v1187_v35 }
 0x371   :  { %1206 = vmatmul.bf16.vlgmr.msra.gmra.mxu2 %v1197_v57  ;;  %1219 = vmatmul.bf16.vlgmr.msra.gmra.mxu3 %v1197_v57 }
 0x372   :  { %1232 = vmatmul.bf16.vlgmr.msra.gmra.mxu0 %v1197_v57  ;;  %1245 = vmatmul.bf16.vlgmr.msrb.gmra.mxu1 %v1197_v57 }
 0x373   :  { %1456 = vmatpush.bf16.msra.mxu2 %v2895_v4  ;;  %1469 = vmatpush.bf16.msra.mxu3 %v2893_v2 }
 0x374   :  { %1482 = vmatpush.bf16.msra.mxu0 %v2911_v23  ;;  %1495 = vmatpush.bf16.msrb.mxu1 %v2952_v5 }
 0x377   :  { %1457 = vmatpush.bf16.msra.mxu2 %v2901_v10  ;;  %1470 = vmatpush.bf16.msra.mxu3 %v2899_v8 }
 0x378   :  { %1483 = vmatpush.bf16.msra.mxu0 %v2921_v33  ;;  %1496 = vmatpush.bf16.msrb.mxu1 %v2961_v15 }
 0x37b   :  { %1458 = vmatpush.bf16.msra.mxu2 %v2907_v16  ;;  %1471 = vmatpush.bf16.msra.mxu3 %v2905_v14 }
 0x37c   :  { %1484 = vmatpush.bf16.msra.mxu0 %v2931_v22  ;;  %1497 = vmatpush.bf16.msrb.mxu1 %v2971_v31 }
 0x37f   :  { %1459 = vmatpush.bf16.msra.mxu2 %v2915_v28  ;;  %1472 = vmatpush.bf16.msra.mxu3 %v2913_v27 }
 0x380   :  { %1485 = vmatpush.bf16.msra.mxu0 %v2943_v53  ;;  %1498 = vmatpush.bf16.msrb.mxu1 %v2980_v40 }
 0x383   :  { %1460 = vmatpush.bf16.msra.mxu2 %v2927_v39  ;;  %1473 = vmatpush.bf16.msra.mxu3 %v2924_v37 }
 0x384   :  { %1486 = vmatpush.bf16.msra.mxu0 %v2950_v62  ;;  %1499 = vmatpush.bf16.msrb.mxu1 %v2987_v44 }
 0x387   :  { %1461 = vmatpush.bf16.msra.mxu2 %v2933_v46  ;;  %1474 = vmatpush.bf16.msra.mxu3 %v2935_v47 }
 0x388   :  { %1487 = vmatpush.bf16.msra.mxu0 %v2959_v13  ;;  %1500 = vmatpush.bf16.msrb.mxu1 %v2992_v49 }
 0x38b   :  { %1462 = vmatpush.bf16.msra.mxu2 %v2941_v50  ;;  %1475 = vmatpush.bf16.msra.mxu3 %v2955_v7 }
 0x38c   :  { %1488 = vmatpush.bf16.msra.mxu0 %v2968_v30  ;;  %1501 = vmatpush.bf16.msrb.mxu1 %v2998_v55 }
 0x38f   :  { %1463 = vmatpush.bf16.msra.mxu2 %v2948_v58  ;;  %1476 = vmatpush.bf16.msra.mxu3 %v2965_v21 }
 0x390   :  { %1489 = vmatpush.bf16.msra.mxu0 %v2977_v38  ;;  %1502 = vmatpush.bf16.msrb.mxu1 %v3004_v59 }
 0x3ef   :  { %v1233_v52 = vpop.f32.mrf.mxu0  ;;  %v1246_v19 = vpop.f32.mrf.mxu1 }
 0x3f0   :  { %v1253_v1 = vadd.f32 %v1246_v19, %v3461_v26  ;;  %v1252_v35 = vadd.f32 %v1233_v52, %v3464_v24 }
 0x3f2   :  { %v2330_v3 = vmul.f32 -1.442695, %v1253_v1 }
 0x3f4   :  { %2558 = vpow2.f32 %v2330_v3  ;;  %v1207_v11 = vpop.f32.mrf.mxu2  ;;  %v1220_v34 = vpop.f32.mrf.mxu3 }
 0x3f5   :  { %v1250_v20 = vadd.f32 %v1207_v11, %v3462_v45  ;;  %v1251_v0 = vadd.f32 %v1220_v34, %v3463_v25 }
 0x3f7   :  { %v2328_v9 = vmul.f32 -1.442695, %v1250_v20  ;;  %v2329_v63 = vmul.f32 -1.442695, %v1251_v0  ;;  %v1235_v36 = vpop.f32.mrf.mxu0  ;;  %v1248_v32 = vpop.f32.mrf.mxu1 }
 0x3f9   :  { %2560 = vpow2.f32 %v2328_v9 }
 0x3fa   :  { %v2559_v41 = vpop.eup %2558  ;;  %2562 = vpow2.f32 %v2329_v63 }
 0x3fb   :  { %v1296_v12 = vadd.f32 1.0, %v2559_v41 }
 0x3fc   :  { %v1209_v51 = vpop.f32.mrf.mxu2  ;;  %v1222_v48 = vpop.f32.mrf.mxu3 }
 0x3fd   :  { %2564 = vrcp.f32 %v1296_v12  ;;  %vm1302_vm12 = vweird.f32 %v1296_v12 }
 0x3ff   :  { %v2561_v18 = vpop.eup %2560 }
 0x400   :  { %v2563_v43 = vpop.eup %2562  ;;  %v1257_v61 = vadd.f32 1.0, %v2561_v18 }
 0x401   :  { %v1276_v56 = vadd.f32 1.0, %v2563_v43 }
 0x402   :  { %2566 = vrcp.f32 %v1257_v61  ;;  %v1269_v11 = vand.u32 2147483648, %v1257_v61  ;;  %v1267_v20 = vand.u32 2147483647, %v1257_v61  ;;  %vm1263_vm5 = vweird.f32 %v1257_v61 }
 0x403   :  { %2568 = vrcp.f32 %v1276_v56  ;;  %v2565_v60 = vpop.eup %2564  ;;  %v1288_v25 = vand.u32 2147483648, %v1276_v56  ;;  %v1286_v9 = vand.u32 2147483647, %v1276_v56  ;;  %vm1282_vm7 = vweird.f32 %v1276_v56 }
 0x404   :  { %v1298_v1 = vmul.f32 %v2565_v60, %v1296_v12  ;;  %2570 = vtanh.f32 %v1252_v35  ;;  %v1270_v52 = vor.u32 1.1754944e-38, %v1269_v11  ;;  %vm1268_vm8 = vcmp.eq.f32.partialorder %v1267_v20, 8.507059e+37 }
 0x405   :  { %v1289_v51 = vor.u32 1.1754944e-38, %v1288_v25  ;;  %vm1287_vm10 = vcmp.eq.f32.partialorder %v1286_v9, 8.507059e+37  ;;  %vm1303_vm11 = vweird.f32 %v2565_v60 }
 0x406   :  { %v1299_v63 = vsub.f32 1.0, %v1298_v1  ;;  %vm1304_vm13 = vmor %vm1302_vm12, %vm1303_vm11  ;;  %vm1446_vm12 = vcmp.eq.s32.totalorder %v3208_v42, 5 }
 0x408   :  { %v2567_v6 = vpop.eup %2566  ;;  %v1300_v24 = vmul.f32 %v2565_v60, %v1299_v63 }
 0x409   :  { %v2569_v57 = vpop.eup %2568  ;;  %v1259_v19 = vmul.f32 %v2567_v6, %v1257_v61  ;;  %vm1264_vm3 = vweird.f32 %v2567_v6 }
 0x40a   :  { %v1278_v26 = vmul.f32 %v2569_v57, %v1276_v56  ;;  %vm1283_vm4 = vweird.f32 %v2569_v57  ;;  %vm1265_vm6 = vmor %vm1263_vm5, %vm1264_vm3  ;;  %v2571_v48 = vpop.eup %2570  ;;  %v1301_v61 = vadd.f32 %v2565_v60, %v1300_v24  ;;  %v1306_v56 = vand.u32 2147483647, %v1296_v12 }
 0x40b   :  { %v1260_v3 = vsub.f32 1.0, %v1259_v19  ;;  %vm1284_vm9 = vmor %vm1282_vm7, %vm1283_vm4 }
 0x40c   :  { %v1279_v34 = vsub.f32 1.0, %v1278_v26  ;;  %vm1307_vm14 = vcmp.eq.f32.partialorder %v1306_v56, 8.507059e+37 }
 0x40d   :  { %v1261_v45 = vmul.f32 %v2567_v6, %v1260_v3  ;;  %v1308_v3 = vand.u32 2147483648, %v1296_v12 }
 0x40e   :  { %v1280_v0 = vmul.f32 %v2569_v57, %v1279_v34 }
 0x40f   :  { %v1262_v36 = vadd.f32 %v2567_v6, %v1261_v45  ;;  %v1309_v11 = vor.u32 1.1754944e-38, %v1308_v3 }
 0x410   :  { %v1281_v32 = vadd.f32 %v2569_v57, %v1280_v0 }
 0x411   :  { %v1266_v41 = vsel %vm1265_vm6, %v2567_v6, %v1262_v36  ;;  %v1305_v6 = vsel %vm1304_vm13, %v2565_v60, %v1301_v61  ;;  %v3465_v60 = vld [vmem:[#allocation20_spill] sm:$0xff]  ;;  %v3466_v36 = vld [vmem:[#allocation19_spill] sm:$0xff] }
 0x412   :  { %v1271_v18 = vsel %vm1268_vm8, %v1270_v52, %v1266_v41  ;;  %v1285_v43 = vsel %vm1284_vm9, %v2569_v57, %v1281_v32  ;;  %v1310_v34 = vsel %vm1307_vm14, %v1309_v11, %v1305_v6  ;;  %v3467_v32 = vld [vmem:[#allocation21_spill] sm:$0xff] }
 0x413   :  { %v1313_v35 = vmul.f32 %v2571_v48, %v1271_v18  ;;  %v1290_v19 = vsel %vm1287_vm10, %v1289_v51, %v1285_v43 }
 0x414   :  { %v1312_v26 = vmul.f32 %v1290_v19, %v3252_v17 }
 0x416   :  { %v3296_v1 = vadd.f32 %v1313_v35, %v1312_v26 }
 0x418   :  { %2572 = vtanh.f32 %v3296_v1 }
 0x41e   :  { %v2573_v57 = vpop.eup %2572 }
 0x41f   :  { %v1316_v45 = vmul.f32 %v2573_v57, %v1310_v34  ;;  %v3468_v34 = vld [vmem:[#allocation22_spill] sm:$0xff] }
 0x421   :  { %v3301_v17 = vsel %vm1317_vm15, %v1316_v45, %v3257_v54  ;;  %v1326_v20 = vpack.c.bf16 %v1316_v45, %v1316_v45 }
 0x423   :  { %1335 = vmatmul.bf16.vlgmr.msrb.gmra.mxu2 %v1326_v20  ;;  %1348 = vmatmul.bf16.vlgmr.msrb.gmra.mxu3 %v1326_v20 }
 0x424   :  { %1361 = vmatmul.bf16.vlgmr.msrb.gmra.mxu0 %v1326_v20  ;;  %1374 = vmatmul.bf16.vlgmr.msra.gmra.mxu1 %v1326_v20 }
 0x425   :  { %1585 = vmatpush.bf16.msrb.mxu2 %v2895_v4  ;;  %1598 = vmatpush.bf16.msrb.mxu3 %v2893_v2 }
 0x426   :  { %1611 = vmatpush.bf16.msrb.mxu0 %v2911_v23  ;;  %1624 = vmatpush.bf16.msra.mxu1 %v2952_v5 }
 0x429   :  { %1586 = vmatpush.bf16.msrb.mxu2 %v2901_v10  ;;  %1599 = vmatpush.bf16.msrb.mxu3 %v2899_v8 }
 0x42a   :  { %1612 = vmatpush.bf16.msrb.mxu0 %v2921_v33  ;;  %1625 = vmatpush.bf16.msra.mxu1 %v2961_v15 }
 0x42d   :  { %1587 = vmatpush.bf16.msrb.mxu2 %v2907_v16  ;;  %1600 = vmatpush.bf16.msrb.mxu3 %v2905_v14 }
 0x42e   :  { %1613 = vmatpush.bf16.msrb.mxu0 %v2931_v22  ;;  %1626 = vmatpush.bf16.msra.mxu1 %v2971_v31 }
 0x431   :  { %1588 = vmatpush.bf16.msrb.mxu2 %v2915_v28  ;;  %1601 = vmatpush.bf16.msrb.mxu3 %v2913_v27 }
 0x432   :  { %1614 = vmatpush.bf16.msrb.mxu0 %v2943_v53  ;;  %1627 = vmatpush.bf16.msra.mxu1 %v2980_v40 }
 0x435   :  { %1589 = vmatpush.bf16.msrb.mxu2 %v2927_v39  ;;  %1602 = vmatpush.bf16.msrb.mxu3 %v2924_v37 }
 0x436   :  { %1615 = vmatpush.bf16.msrb.mxu0 %v2950_v62  ;;  %1628 = vmatpush.bf16.msra.mxu1 %v2987_v44 }
 0x439   :  { %1590 = vmatpush.bf16.msrb.mxu2 %v2933_v46  ;;  %1603 = vmatpush.bf16.msrb.mxu3 %v2935_v47 }
 0x43a   :  { %1616 = vmatpush.bf16.msrb.mxu0 %v2959_v13  ;;  %1629 = vmatpush.bf16.msra.mxu1 %v2992_v49 }
 0x43d   :  { %1591 = vmatpush.bf16.msrb.mxu2 %v2941_v50  ;;  %1604 = vmatpush.bf16.msrb.mxu3 %v2955_v7 }
 0x43e   :  { %1617 = vmatpush.bf16.msrb.mxu0 %v2968_v30  ;;  %1630 = vmatpush.bf16.msra.mxu1 %v2998_v55 }
 0x441   :  { %1592 = vmatpush.bf16.msrb.mxu2 %v2948_v58  ;;  %1605 = vmatpush.bf16.msrb.mxu3 %v2965_v21 }
 0x442   :  { %1618 = vmatpush.bf16.msrb.mxu0 %v2977_v38  ;;  %1631 = vmatpush.bf16.msra.mxu1 %v3004_v59 }
 0x4a1   :  { %v1362_v54 = vpop.f32.mrf.mxu0  ;;  %v1375_v12 = vpop.f32.mrf.mxu1 }
 0x4a2   :  { %v1382_v25 = vadd.f32 %v1375_v12, %v3465_v60  ;;  %v1381_v45 = vadd.f32 %v1362_v54, %v3468_v34 }
 0x4a4   :  { %v2333_v0 = vmul.f32 -1.442695, %v1382_v25 }
 0x4a6   :  { %2574 = vpow2.f32 %v2333_v0  ;;  %v1336_v9 = vpop.f32.mrf.mxu2  ;;  %v1349_v63 = vpop.f32.mrf.mxu3 }
 0x4a7   :  { %v1379_v52 = vadd.f32 %v1336_v9, %v3466_v36  ;;  %v1380_v41 = vadd.f32 %v1349_v63, %v3467_v32 }
 0x4a9   :  { %v2331_v51 = vmul.f32 -1.442695, %v1379_v52  ;;  %v2332_v48 = vmul.f32 -1.442695, %v1380_v41  ;;  %v1364_v18 = vpop.f32.mrf.mxu0  ;;  %v1377_v43 = vpop.f32.mrf.mxu1 }
 0x4ab   :  { %2576 = vpow2.f32 %v2331_v51 }
 0x4ac   :  { %v2575_v24 = vpop.eup %2574  ;;  %2578 = vpow2.f32 %v2332_v48 }
 0x4ad   :  { %v1425_v26 = vadd.f32 1.0, %v2575_v24 }
 0x4ae   :  { %v1338_v35 = vpop.f32.mrf.mxu2  ;;  %v1351_v19 = vpop.f32.mrf.mxu3 }
 0x4af   :  { %2580 = vrcp.f32 %v1425_v26  ;;  %vm1431_vm9 = vweird.f32 %v1425_v26 }
 0x4b1   :  { %v2577_v61 = vpop.eup %2576 }
 0x4b2   :  { %v2579_v3 = vpop.eup %2578  ;;  %v1386_v56 = vadd.f32 1.0, %v2577_v61 }
 0x4b3   :  { %v1405_v6 = vadd.f32 1.0, %v2579_v3 }
 0x4b4   :  { %2582 = vrcp.f32 %v1386_v56  ;;  %v1398_v9 = vand.u32 2147483648, %v1386_v56  ;;  %v1396_v52 = vand.u32 2147483647, %v1386_v56  ;;  %vm1392_vm2 = vweird.f32 %v1386_v56 }
 0x4b5   :  { %2584 = vrcp.f32 %v1405_v6  ;;  %v2581_v11 = vpop.eup %2580  ;;  %v1417_v32 = vand.u32 2147483648, %v1405_v6  ;;  %v1415_v51 = vand.u32 2147483647, %v1405_v6  ;;  %vm1411_vm4 = vweird.f32 %v1405_v6 }
 0x4b6   :  { %v1427_v25 = vmul.f32 %v2581_v11, %v1425_v26  ;;  %2586 = vtanh.f32 %v1381_v45  ;;  %v1399_v54 = vor.u32 1.1754944e-38, %v1398_v9  ;;  %vm1397_vm5 = vcmp.eq.f32.partialorder %v1396_v52, 8.507059e+37 }
 0x4b7   :  { %v1418_v35 = vor.u32 1.1754944e-38, %v1417_v32  ;;  %vm1416_vm7 = vcmp.eq.f32.partialorder %v1415_v51, 8.507059e+37  ;;  %vm1432_vm8 = vweird.f32 %v2581_v11 }
 0x4b8   :  { %v1428_v48 = vsub.f32 1.0, %v1427_v25  ;;  %vm1433_vm10 = vmor %vm1431_vm9, %vm1432_vm8  ;;  %vm1575_vm9 = vcmp.eq.s32.totalorder %v3208_v42, 6 }
 0x4ba   :  { %v2583_v57 = vpop.eup %2582  ;;  %v1429_v34 = vmul.f32 %v2581_v11, %v1428_v48 }
 0x4bb   :  { %v2585_v20 = vpop.eup %2584  ;;  %v1388_v12 = vmul.f32 %v2583_v57, %v1386_v56  ;;  %vm1393_vm0 = vweird.f32 %v2583_v57 }
 0x4bc   :  { %v1407_v60 = vmul.f32 %v2585_v20, %v1405_v6  ;;  %vm1412_vm1 = vweird.f32 %v2585_v20  ;;  %vm1394_vm3 = vmor %vm1392_vm2, %vm1393_vm0  ;;  %v2587_v19 = vpop.eup %2586  ;;  %v1430_v56 = vadd.f32 %v2581_v11, %v1429_v34  ;;  %v1435_v6 = vand.u32 2147483647, %v1425_v26 }
 0x4bd   :  { %v1389_v0 = vsub.f32 1.0, %v1388_v12  ;;  %vm1413_vm6 = vmor %vm1411_vm4, %vm1412_vm1 }
 0x4be   :  { %v1408_v63 = vsub.f32 1.0, %v1407_v60  ;;  %vm1436_vm11 = vcmp.eq.f32.partialorder %v1435_v6, 8.507059e+37 }
 0x4bf   :  { %v1390_v36 = vmul.f32 %v2583_v57, %v1389_v0  ;;  %v1437_v0 = vand.u32 2147483648, %v1425_v26 }
 0x4c0   :  { %v1409_v41 = vmul.f32 %v2585_v20, %v1408_v63 }
 0x4c1   :  { %v1391_v18 = vadd.f32 %v2583_v57, %v1390_v36  ;;  %v1438_v9 = vor.u32 1.1754944e-38, %v1437_v0 }
 0x4c2   :  { %v1410_v43 = vadd.f32 %v2585_v20, %v1409_v41 }
 0x4c3   :  { %v1395_v24 = vsel %vm1394_vm3, %v2583_v57, %v1391_v18  ;;  %v1434_v57 = vsel %vm1433_vm10, %v2581_v11, %v1430_v56 }
 0x4c4   :  { %v1400_v61 = vsel %vm1397_vm5, %v1399_v54, %v1395_v24  ;;  %v1414_v3 = vsel %vm1413_vm6, %v2585_v20, %v1410_v43  ;;  %v1439_v63 = vsel %vm1436_vm11, %v1438_v9, %v1434_v57 }
 0x4c5   :  { %v1442_v45 = vmul.f32 %v2587_v19, %v1400_v61  ;;  %v1419_v12 = vsel %vm1416_vm7, %v1418_v35, %v1414_v3 }
 0x4c6   :  { %v1441_v60 = vmul.f32 %v1419_v12, %v3296_v1 }
 0x4c8   :  { %v3340_v25 = vadd.f32 %v1442_v45, %v1441_v60 }
 0x4ca   :  { %2588 = vtanh.f32 %v3340_v25 }
 0x4d0   :  { %v2589_v20 = vpop.eup %2588 }
 0x4d1   :  { %v1445_v36 = vmul.f32 %v2589_v20, %v1439_v63 }
 0x4d3   :  { %v3345_v1 = vsel %vm1446_vm12, %v1445_v36, %v3301_v17  ;;  %v1455_v52 = vpack.c.bf16 %v1445_v36, %v1445_v36 }
 0x4d5   :  { %1464 = vmatmul.bf16.vlgmr.msra.gmra.mxu2 %v1455_v52  ;;  %1477 = vmatmul.bf16.vlgmr.msra.gmra.mxu3 %v1455_v52 }
 0x4d6   :  { %1490 = vmatmul.bf16.vlgmr.msra.gmra.mxu0 %v1455_v52  ;;  %1503 = vmatmul.bf16.vlgmr.msrb.gmra.mxu1 %v1455_v52 }
 0x4d7   :  { %1714 = vmatpush.bf16.msra.mxu2 %v2895_v4  ;;  %1727 = vmatpush.bf16.msra.mxu3 %v2893_v2 }
 0x4d8   :  { %1740 = vmatpush.bf16.msra.mxu0 %v2911_v23  ;;  %1753 = vmatpush.bf16.msrb.mxu1 %v2952_v5 }
 0x4db   :  { %1715 = vmatpush.bf16.msra.mxu2 %v2901_v10  ;;  %1728 = vmatpush.bf16.msra.mxu3 %v2899_v8  ;;  %v3469_v8 = vld [vmem:[#allocation24_spill] sm:$0xff] }
 0x4dc   :  { %1741 = vmatpush.bf16.msra.mxu0 %v2921_v33  ;;  %1754 = vmatpush.bf16.msrb.mxu1 %v2961_v15  ;;  %v3471_v33 = vld [vmem:[#allocation25_spill] sm:$0xff] }
 0x4df   :  { %1716 = vmatpush.bf16.msra.mxu2 %v2907_v16  ;;  %1729 = vmatpush.bf16.msra.mxu3 %v2905_v14 }
 0x4e0   :  { %1742 = vmatpush.bf16.msra.mxu0 %v2931_v22  ;;  %1755 = vmatpush.bf16.msrb.mxu1 %v2971_v31  ;;  %v3472_v31 = vld [vmem:[#allocation26_spill] sm:$0xff] }
 0x4e3   :  { %1717 = vmatpush.bf16.msra.mxu2 %v2915_v28  ;;  %1730 = vmatpush.bf16.msra.mxu3 %v2913_v27  ;;  %v3470_v27 = vld [vmem:[#allocation23_spill] sm:$0xff] }
 0x4e4   :  { %1743 = vmatpush.bf16.msra.mxu0 %v2943_v53  ;;  %1756 = vmatpush.bf16.msrb.mxu1 %v2980_v40 }
 0x4e7   :  { %1718 = vmatpush.bf16.msra.mxu2 %v2927_v39  ;;  %1731 = vmatpush.bf16.msra.mxu3 %v2924_v37 }
 0x4e8   :  { %1744 = vmatpush.bf16.msra.mxu0 %v2950_v62  ;;  %1757 = vmatpush.bf16.msrb.mxu1 %v2987_v44 }
 0x4eb   :  { %1719 = vmatpush.bf16.msra.mxu2 %v2933_v46  ;;  %1732 = vmatpush.bf16.msra.mxu3 %v2935_v47 }
 0x4ec   :  { %1745 = vmatpush.bf16.msra.mxu0 %v2959_v13  ;;  %1758 = vmatpush.bf16.msrb.mxu1 %v2992_v49 }
 0x4ef   :  { %1720 = vmatpush.bf16.msra.mxu2 %v2941_v50  ;;  %1733 = vmatpush.bf16.msra.mxu3 %v2955_v7 }
 0x4f0   :  { %1746 = vmatpush.bf16.msra.mxu0 %v2968_v30  ;;  %1759 = vmatpush.bf16.msrb.mxu1 %v2998_v55 }
 0x4f3   :  { %1721 = vmatpush.bf16.msra.mxu2 %v2948_v58  ;;  %1734 = vmatpush.bf16.msra.mxu3 %v2965_v21 }
 0x4f4   :  { %1747 = vmatpush.bf16.msra.mxu0 %v2977_v38  ;;  %1760 = vmatpush.bf16.msrb.mxu1 %v3004_v59 }
 0x553   :  { %v1491_v2 = vpop.f32.mrf.mxu0  ;;  %v1504_v4 = vpop.f32.mrf.mxu1 }
 0x554   :  { %v1511_v10 = vadd.f32 %v1504_v4, %v3469_v8  ;;  %v1510_v38 = vadd.f32 %v1491_v2, %v3472_v31 }
 0x556   :  { %v2336_v14 = vmul.f32 -1.442695, %v1511_v10 }
 0x558   :  { %2590 = vpow2.f32 %v2336_v14  ;;  %v1465_v16 = vpop.f32.mrf.mxu2  ;;  %v1478_v23 = vpop.f32.mrf.mxu3  ;;  %v3473_v14 = vld [vmem:[#allocation28_spill] sm:$0xff] }
 0x559   :  { %v1508_v28 = vadd.f32 %v1465_v16, %v3470_v27  ;;  %v1509_v37 = vadd.f32 %v1478_v23, %v3471_v33  ;;  %v3474_v33 = vld [vmem:[#allocation27_spill] sm:$0xff] }
 0x55b   :  { %v2334_v39 = vmul.f32 -1.442695, %v1508_v28  ;;  %v2335_v22 = vmul.f32 -1.442695, %v1509_v37  ;;  %v1493_v46 = vpop.f32.mrf.mxu0  ;;  %v1506_v47 = vpop.f32.mrf.mxu1 }
 0x55d   :  { %2592 = vpow2.f32 %v2334_v39  ;;  %v3475_v39 = vld [vmem:[#allocation29_spill] sm:$0xff] }
 0x55e   :  { %v2591_v50 = vpop.eup %2590  ;;  %2594 = vpow2.f32 %v2335_v22 }
 0x55f   :  { %v1554_v62 = vadd.f32 1.0, %v2591_v50 }
 0x560   :  { %v1467_v53 = vpop.f32.mrf.mxu2  ;;  %v1480_v58 = vpop.f32.mrf.mxu3 }
 0x561   :  { %2596 = vrcp.f32 %v1554_v62  ;;  %v1566_v57 = vand.u32 2147483648, %v1554_v62  ;;  %vm1560_vm6 = vweird.f32 %v1554_v62  ;;  %v1564_v9 = vand.u32 2147483647, %v1554_v62 }
 0x563   :  { %v2593_v5 = vpop.eup %2592  ;;  %v1567_v63 = vor.u32 1.1754944e-38, %v1566_v57  ;;  %vm1565_vm8 = vcmp.eq.f32.partialorder %v1564_v9, 8.507059e+37 }
 0x564   :  { %v2595_v7 = vpop.eup %2594  ;;  %v1515_v13 = vadd.f32 1.0, %v2593_v5 }
 0x565   :  { %v1534_v15 = vadd.f32 1.0, %v2595_v7 }
 0x566   :  { %2598 = vrcp.f32 %v1515_v13  ;;  %v1527_v17 = vand.u32 2147483648, %v1515_v13  ;;  %v1525_v32 = vand.u32 2147483647, %v1515_v13  ;;  %vm1521_vm15 = vweird.f32 %v1515_v13 }
 0x567   :  { %2600 = vrcp.f32 %v1534_v15  ;;  %v2597_v21 = vpop.eup %2596  ;;  %v1546_v41 = vand.u32 2147483648, %v1534_v15  ;;  %v1544_v48 = vand.u32 2147483647, %v1534_v15  ;;  %vm1540_vm1 = vweird.f32 %v1534_v15 }
 0x568   :  { %v1556_v55 = vmul.f32 %v2597_v21, %v1554_v62  ;;  %2602 = vtanh.f32 %v1510_v38  ;;  %v1528_v43 = vor.u32 1.1754944e-38, %v1527_v17  ;;  %vm1526_vm2 = vcmp.eq.f32.partialorder %v1525_v32, 8.507059e+37  ;;  %v3476_v38 = vld [vmem:[#allocation30_spill] sm:$0xff] }
 0x569   :  { %v1547_v19 = vor.u32 1.1754944e-38, %v1546_v41  ;;  %vm1545_vm4 = vcmp.eq.f32.partialorder %v1544_v48, 8.507059e+37  ;;  %vm1561_vm5 = vweird.f32 %v2597_v21 }
 0x56a   :  { %v1557_v18 = vsub.f32 1.0, %v1556_v55  ;;  %vm1562_vm7 = vmor %vm1560_vm6, %vm1561_vm5  ;;  %vm1704_vm6 = vcmp.eq.s32.totalorder %v3208_v42, 7 }
 0x56c   :  { %v2599_v30 = vpop.eup %2598  ;;  %v1558_v45 = vmul.f32 %v2597_v21, %v1557_v18 }
 0x56d   :  { %v2601_v40 = vpop.eup %2600  ;;  %v1517_v44 = vmul.f32 %v2599_v30, %v1515_v13  ;;  %vm1522_vm13 = vweird.f32 %v2599_v30 }
 0x56e   :  { %v1536_v49 = vmul.f32 %v2601_v40, %v1534_v15  ;;  %vm1541_vm14 = vweird.f32 %v2601_v40  ;;  %vm1523_vm0 = vmor %vm1521_vm15, %vm1522_vm13  ;;  %v2603_v61 = vpop.eup %2602  ;;  %v1559_v6 = vadd.f32 %v2597_v21, %v1558_v45 }
 0x56f   :  { %v1518_v59 = vsub.f32 1.0, %v1517_v44  ;;  %vm1542_vm3 = vmor %vm1540_vm1, %vm1541_vm14 }
 0x570   :  { %v1537_v26 = vsub.f32 1.0, %v1536_v49  ;;  %v1563_v20 = vsel %vm1562_vm7, %v2597_v21, %v1559_v6 }
 0x571   :  { %v1519_v11 = vmul.f32 %v2599_v30, %v1518_v59  ;;  %v1568_v52 = vsel %vm1565_vm8, %v1567_v63, %v1563_v20 }
 0x572   :  { %v1538_v51 = vmul.f32 %v2601_v40, %v1537_v26 }
 0x573   :  { %v1520_v54 = vadd.f32 %v2599_v30, %v1519_v11 }
 0x574   :  { %v1539_v24 = vadd.f32 %v2601_v40, %v1538_v51 }
 0x575   :  { %v1524_v35 = vsel %vm1523_vm0, %v2599_v30, %v1520_v54 }
 0x576   :  { %v1529_v3 = vsel %vm1526_vm2, %v1528_v43, %v1524_v35  ;;  %v1543_v34 = vsel %vm1542_vm3, %v2601_v40, %v1539_v24 }
 0x577   :  { %v1571_v12 = vmul.f32 %v2603_v61, %v1529_v3  ;;  %v1548_v60 = vsel %vm1545_vm4, %v1547_v19, %v1543_v34 }
 0x578   :  { %v1570_v56 = vmul.f32 %v1548_v60, %v3340_v25 }
 0x57a   :  { %v3384_v0 = vadd.f32 %v1571_v12, %v1570_v56 }
 0x57c   :  { %2604 = vtanh.f32 %v3384_v0 }
 0x582   :  { %v2605_v36 = vpop.eup %2604 }
 0x583   :  { %v1574_v2 = vmul.f32 %v2605_v36, %v1568_v52 }
 0x585   :  { %v3389_v25 = vsel %vm1575_vm9, %v1574_v2, %v3345_v1  ;;  %v1584_v4 = vpack.c.bf16 %v1574_v2, %v1574_v2 }
 0x587   :  { %1593 = vmatmul.bf16.vlgmr.msrb.gmra.mxu2 %v1584_v4  ;;  %1606 = vmatmul.bf16.vlgmr.msrb.gmra.mxu3 %v1584_v4 }
 0x588   :  { %1619 = vmatmul.bf16.vlgmr.msrb.gmra.mxu0 %v1584_v4  ;;  %1632 = vmatmul.bf16.vlgmr.msra.gmra.mxu1 %v1584_v4 }
 0x605   :  { %v1620_v8 = vpop.f32.mrf.mxu0  ;;  %v1633_v10 = vpop.f32.mrf.mxu1 }
 0x606   :  { %v1640_v16 = vadd.f32 %v1633_v10, %v3473_v14  ;;  %v1639_v40 = vadd.f32 %v1620_v8, %v3476_v38  ;;  %v2486_v14 = vld [vmem:[#allocation7 + $0x38] sm:$0xff] }
 0x607   :  { %1904 = vmatpush.bf16.msrb.mxu2 %v2486_v14  ;;  %v2490_v14 = vld [vmem:[#allocation8 + $0x18] sm:$0xff] }
 0x608   :  { %v2339_v23 = vmul.f32 -1.442695, %v1640_v16  ;;  %v2485_v16 = vld [vmem:[#allocation7 + $0x30] sm:$0xff] }
 0x60a   :  { %2606 = vpow2.f32 %v2339_v23  ;;  %v1594_v27 = vpop.f32.mrf.mxu2  ;;  %v1607_v28 = vpop.f32.mrf.mxu3  ;;  %v2484_v23 = vld [vmem:[#allocation7 + $0x28] sm:$0xff] }
 0x60b   :  { %v1637_v37 = vadd.f32 %v1594_v27, %v3474_v33  ;;  %v1638_v22 = vadd.f32 %v1607_v28, %v3475_v39  ;;  %1905 = vmatpush.bf16.msrb.mxu2 %v2485_v16  ;;  %v3477_v27 = vld [vmem:[#allocation13_spill] sm:$0xff] }
 0x60c   :  { %v574_v28 = vadd.f32 %v3195_v29, %v3477_v27  ;;  %v2483_v39 = vld [vmem:[#allocation7 + $0x20] sm:$0xff]  ;;  %v2481_v29 = vld [vmem:[#allocation7 + $0x10] sm:$0xff] }
 0x60d   :  { %v2337_v46 = vmul.f32 -1.442695, %v1637_v37  ;;  %v2338_v1 = vmul.f32 -1.442695, %v1638_v22  ;;  %v1622_v47 = vpop.f32.mrf.mxu0  ;;  %v1635_v50 = vpop.f32.mrf.mxu1 }
 0x60e   :  { %v3478_v50 = vld [vmem:[#allocation31_spill] sm:$0xff] }
 0x60f   :  { %2608 = vpow2.f32 %v2337_v46  ;;  %1906 = vmatpush.bf16.msrb.mxu2 %v2484_v23  ;;  %v2482_v46 = vld [vmem:[#allocation7 + $0x18] sm:$0xff] }
 0x610   :  { %v2607_v53 = vpop.eup %2606  ;;  %2610 = vpow2.f32 %v2338_v1 }
 0x611   :  { %v1683_v5 = vadd.f32 1.0, %v2607_v53 }
 0x612   :  { %v1596_v58 = vpop.f32.mrf.mxu2  ;;  %v1609_v62 = vpop.f32.mrf.mxu3 }
 0x613   :  { %2612 = vrcp.f32 %v1683_v5  ;;  %v1695_v20 = vand.u32 2147483648, %v1683_v5  ;;  %vm1689_vm3 = vweird.f32 %v1683_v5  ;;  %v1693_v63 = vand.u32 2147483647, %v1683_v5  ;;  %1907 = vmatpush.bf16.msrb.mxu2 %v2483_v39  ;;  %v3479_v58 = vld [vmem:[#allocation32_spill] sm:$0xff] }
 0x615   :  { %v2609_v7 = vpop.eup %2608  ;;  %v1696_v52 = vor.u32 1.1754944e-38, %v1695_v20  ;;  %vm1694_vm5 = vcmp.eq.f32.partialorder %v1693_v63, 8.507059e+37 }
 0x616   :  { %v2611_v13 = vpop.eup %2610  ;;  %v1644_v15 = vadd.f32 1.0, %v2609_v7 }
 0x617   :  { %v1663_v21 = vadd.f32 1.0, %v2611_v13  ;;  %1908 = vmatpush.bf16.msrb.mxu2 %v2482_v46 }
 0x618   :  { %2614 = vrcp.f32 %v1644_v15  ;;  %v1656_v26 = vand.u32 2147483648, %v1644_v15  ;;  %v1654_v41 = vand.u32 2147483647, %v1644_v15  ;;  %vm1650_vm12 = vweird.f32 %v1644_v15 }
 0x619   :  { %2616 = vrcp.f32 %v1663_v21  ;;  %v2613_v30 = vpop.eup %2612  ;;  %v1675_v51 = vand.u32 2147483648, %v1663_v21  ;;  %v1673_v18 = vand.u32 2147483647, %v1663_v21  ;;  %vm1669_vm14 = vweird.f32 %v1663_v21 }
 0x61a   :  { %v1685_v59 = vmul.f32 %v2613_v30, %v1683_v5  ;;  %2618 = vtanh.f32 %v1639_v40  ;;  %v1657_v24 = vor.u32 1.1754944e-38, %v1656_v26  ;;  %vm1655_vm15 = vcmp.eq.f32.partialorder %v1654_v41, 8.507059e+37  ;;  %v2494_v26 = vld [vmem:[#allocation8 + $0x38] sm:$0xff] }
 0x61b   :  { %v1676_v61 = vor.u32 1.1754944e-38, %v1675_v51  ;;  %vm1674_vm1 = vcmp.eq.f32.partialorder %v1673_v18, 8.507059e+37  ;;  %vm1690_vm2 = vweird.f32 %v2613_v30  ;;  %1909 = vmatpush.bf16.msrb.mxu2 %v2481_v29  ;;  %1987 = vmatpush.bf16.msrb.mxu3 %v2494_v26  ;;  %v3480_v51 = vld [vmem:[#allocation33_spill] sm:$0xff] }
 0x61c   :  { %v1686_v54 = vsub.f32 1.0, %v1685_v59  ;;  %vm1691_vm4 = vmor %vm1689_vm3, %vm1690_vm2  ;;  %vm1833_vm3 = vcmp.eq.s32.totalorder %v3208_v42, 8  ;;  %v2509_v42 = vld [vmem:[%s3436_s9] ss:$0 sm:$0xff] }
 0x61e   :  { %v2615_v31 = vpop.eup %2614  ;;  %v1687_v12 = vmul.f32 %v2613_v30, %v1686_v54 }
 0x61f   :  { %v2617_v44 = vpop.eup %2616  ;;  %v1646_v49 = vmul.f32 %v2615_v31, %v1644_v15  ;;  %vm1651_vm10 = vweird.f32 %v2615_v31 }
 0x620   :  { %v1665_v55 = vmul.f32 %v2617_v44, %v1663_v21  ;;  %vm1670_vm11 = vweird.f32 %v2617_v44  ;;  %vm1652_vm13 = vmor %vm1650_vm12, %vm1651_vm10  ;;  %v2619_v3 = vpop.eup %2618  ;;  %v1688_v9 = vadd.f32 %v2613_v30, %v1687_v12  ;;  %v2480_v21 = vld [vmem:[#allocation7 + $0x8] sm:$0xff] }
 0x621   :  { %v1647_v17 = vsub.f32 1.0, %v1646_v49  ;;  %vm1671_vm0 = vmor %vm1669_vm14, %vm1670_vm11  ;;  %1910 = vmatpush.bf16.msrb.mxu2 %v2480_v21 }
 0x622   :  { %v1666_v11 = vsub.f32 1.0, %v1665_v55  ;;  %v1692_v36 = vsel %vm1691_vm4, %v2613_v30, %v1688_v9 }
 0x623   :  { %v1648_v32 = vmul.f32 %v2615_v31, %v1647_v17  ;;  %v1697_v4 = vsel %vm1694_vm5, %v1696_v52, %v1692_v36 }
 0x624   :  { %v1667_v48 = vmul.f32 %v2617_v44, %v1666_v11  ;;  %v2493_v11 = vld [vmem:[#allocation8 + $0x30] sm:$0xff] }
 0x625   :  { %v1649_v43 = vadd.f32 %v2615_v31, %v1648_v32  ;;  %1988 = vmatpush.bf16.msrb.mxu3 %v2493_v11 }
 0x626   :  { %v1668_v35 = vadd.f32 %v2617_v44, %v1667_v48 }
 0x627   :  { %v1653_v19 = vsel %vm1652_vm13, %v2615_v31, %v1649_v43 }
 0x628   :  { %v1658_v34 = vsel %vm1655_vm15, %v1657_v24, %v1653_v19  ;;  %v1672_v45 = vsel %vm1671_vm0, %v2617_v44, %v1668_v35  ;;  %v2479_v44 = vld [vmem:[#allocation7] sm:$0xff]  ;;  %v2492_v24 = vld [vmem:[#allocation8 + $0x28] sm:$0xff] }
 0x629   :  { %v1700_v60 = vmul.f32 %v2619_v3, %v1658_v34  ;;  %v1677_v56 = vsel %vm1674_vm1, %v1676_v61, %v1672_v45  ;;  %1911 = vmatpush.bf16.msrb.mxu2 %v2479_v44  ;;  %1989 = vmatpush.bf16.msrb.mxu3 %v2492_v24 }
 0x62a   :  { %v1699_v6 = vmul.f32 %v1677_v56, %v3384_v0 }
 0x62c   :  { %v3396_v57 = vadd.f32 %v1700_v60, %v1699_v6  ;;  %v2491_v6 = vld [vmem:[#allocation8 + $0x20] sm:$0xff] }
 0x62d   :  { %1990 = vmatpush.bf16.msrb.mxu3 %v2491_v6 }
 0x62e   :  { %2620 = vtanh.f32 %v3396_v57 }
 0x631   :  { %1991 = vmatpush.bf16.msrb.mxu3 %v2490_v14 }
 0x634   :  { %v2621_v2 = vpop.eup %2620 }
 0x635   :  { %v1703_v8 = vmul.f32 %v2621_v2, %v1697_v4 }
 0x637   :  { %v3401_v0 = vsel %vm1704_vm6, %v1703_v8, %v3389_v25  ;;  %v1713_v10 = vpack.c.bf16 %v1703_v8, %v1703_v8 }
 0x639   :  { %1722 = vmatmul.bf16.vlgmr.msra.gmra.mxu2 %v1713_v10  ;;  %1735 = vmatmul.bf16.vlgmr.msra.gmra.mxu3 %v1713_v10 }
 0x63a   :  { %1748 = vmatmul.bf16.vlgmr.msra.gmra.mxu0 %v1713_v10  ;;  %1761 = vmatmul.bf16.vlgmr.msrb.gmra.mxu1 %v1713_v10 }
 0x6b7   :  { %v1749_v33 = vpop.f32.mrf.mxu0  ;;  %v1762_v37 = vpop.f32.mrf.mxu1 }
 0x6b8   :  { %v1769_v22 = vadd.f32 %v1762_v37, %v574_v28  ;;  %v1768_v48 = vadd.f32 %v1749_v33, %v3480_v51  ;;  %v2489_v37 = vld [vmem:[#allocation8 + $0x10] sm:$0xff] }
 0x6b9   :  { %1992 = vmatpush.bf16.msrb.mxu3 %v2489_v37 }
 0x6ba   :  { %v2342_v25 = vmul.f32 -1.442695, %v1769_v22 }
 0x6bc   :  { %2622 = vpow2.f32 %v2342_v25  ;;  %v1723_v1 = vpop.f32.mrf.mxu2  ;;  %v1736_v47 = vpop.f32.mrf.mxu3 }
 0x6bd   :  { %v1766_v53 = vadd.f32 %v1723_v1, %v3478_v50  ;;  %v1767_v62 = vadd.f32 %v1736_v47, %v3479_v58 }
 0x6bf   :  { %v2340_v5 = vmul.f32 -1.442695, %v1766_v53  ;;  %v2341_v7 = vmul.f32 -1.442695, %v1767_v62  ;;  %v1751_v13 = vpop.f32.mrf.mxu0  ;;  %v1764_v15 = vpop.f32.mrf.mxu1  ;;  %v2488_v62 = vld [vmem:[#allocation8 + $0x8] sm:$0xff] }
 0x6c0   :  { %1993 = vmatpush.bf16.msrb.mxu3 %v2488_v62 }
 0x6c1   :  { %2624 = vpow2.f32 %v2340_v5  ;;  %v2487_v5 = vld [vmem:[#allocation8] sm:$0xff] }
 0x6c2   :  { %v2623_v30 = vpop.eup %2622  ;;  %2626 = vpow2.f32 %v2341_v7  ;;  %v2508_v7 = vld [vmem:[%s3434_s7] ss:$0 sm:$0xff] }
 0x6c3   :  { %v3407_v40 = vadd.f32 1.0, %v2623_v30 }
 0x6c4   :  { %v1725_v31 = vpop.f32.mrf.mxu2  ;;  %v1738_v38 = vpop.f32.mrf.mxu3  ;;  %1994 = vmatpush.bf16.msrb.mxu3 %v2487_v5 }
 0x6c5   :  { %2628 = vrcp.f32 %v3407_v40  ;;  %v1824_v22 = vand.u32 2147483648, %v3407_v40  ;;  %vm1818_vm0 = vweird.f32 %v3407_v40  ;;  %v1822_v25 = vand.u32 2147483647, %v3407_v40 }
 0x6c7   :  { %v2625_v49 = vpop.eup %2624  ;;  %v1825_v1 = vor.u32 1.1754944e-38, %v1824_v22  ;;  %vm1823_vm2 = vcmp.eq.f32.partialorder %v1822_v25, 8.507059e+37 }
 0x6c8   :  { %v2627_v55 = vpop.eup %2626  ;;  %v1773_v59 = vadd.f32 1.0, %v2625_v49 }
 0x6c9   :  { %v1792_v17 = vadd.f32 1.0, %v2627_v55 }
 0x6ca   :  { %2630 = vrcp.f32 %v1773_v59  ;;  %v1785_v61 = vand.u32 2147483648, %v1773_v59  ;;  %v1783_v45 = vand.u32 2147483647, %v1773_v59  ;;  %vm1779_vm9 = vweird.f32 %v1773_v59 }
 0x6cb   :  { %2632 = vrcp.f32 %v1792_v17  ;;  %v2629_v32 = vpop.eup %2628  ;;  %v1804_v12 = vand.u32 2147483648, %v1792_v17  ;;  %v1802_v56 = vand.u32 2147483647, %v1792_v17  ;;  %vm1798_vm11 = vweird.f32 %v1792_v17 }
 0x6cc   :  { %v1814_v35 = vmul.f32 %v2629_v32, %v3407_v40  ;;  %2634 = vtanh.f32 %v1768_v48  ;;  %v1786_v63 = vor.u32 1.1754944e-38, %v1785_v61  ;;  %vm1784_vm12 = vcmp.eq.f32.partialorder %v1783_v45, 8.507059e+37 }
 0x6cd   :  { %v1805_v2 = vor.u32 1.1754944e-38, %v1804_v12  ;;  %vm1803_vm14 = vcmp.eq.f32.partialorder %v1802_v56, 8.507059e+37  ;;  %vm1819_vm15 = vweird.f32 %v2629_v32 }
 0x6ce   :  { %v1815_v9 = vsub.f32 1.0, %v1814_v35  ;;  %vm1820_vm1 = vmor %vm1818_vm0, %vm1819_vm15 }
 0x6d0   :  { %v2631_v41 = vpop.eup %2630  ;;  %v1816_v16 = vmul.f32 %v2629_v32, %v1815_v9 }
 0x6d1   :  { %v2633_v18 = vpop.eup %2632  ;;  %v1775_v54 = vmul.f32 %v2631_v41, %v1773_v59  ;;  %vm1780_vm7 = vweird.f32 %v2631_v41 }
 0x6d2   :  { %v1794_v43 = vmul.f32 %v2633_v18, %v1792_v17  ;;  %vm1799_vm8 = vweird.f32 %v2633_v18  ;;  %vm1781_vm10 = vmor %vm1779_vm9, %vm1780_vm7  ;;  %v2635_v4 = vpop.eup %2634  ;;  %v1817_v39 = vadd.f32 %v2629_v32, %v1816_v16 }
 0x6d3   :  { %v1776_v19 = vsub.f32 1.0, %v1775_v54  ;;  %vm1800_vm13 = vmor %vm1798_vm11, %vm1799_vm8 }
 0x6d4   :  { %v1795_v3 = vsub.f32 1.0, %v1794_v43  ;;  %v1821_v46 = vsel %vm1820_vm1, %v2629_v32, %v1817_v39 }
 0x6d5   :  { %v1777_v34 = vmul.f32 %v2631_v41, %v1776_v19  ;;  %v1826_v50 = vsel %vm1823_vm2, %v1825_v1, %v1821_v46 }
 0x6d6   :  { %v1796_v60 = vmul.f32 %v2633_v18, %v1795_v3 }
 0x6d7   :  { %v1778_v20 = vadd.f32 %v2631_v41, %v1777_v34 }
 0x6d8   :  { %v1797_v36 = vadd.f32 %v2633_v18, %v1796_v60 }
 0x6d9   :  { %v1782_v52 = vsel %vm1781_vm10, %v2631_v41, %v1778_v20 }
 0x6da   :  { %v1787_v8 = vsel %vm1784_vm12, %v1786_v63, %v1782_v52  ;;  %v1801_v10 = vsel %vm1800_vm13, %v2633_v18, %v1797_v36 }
 0x6db   :  { %v1829_v23 = vmul.f32 %v2635_v4, %v1787_v8  ;;  %v1806_v27 = vsel %vm1803_vm14, %v1805_v2, %v1801_v10 }
 0x6dc   :  { %v1828_v28 = vmul.f32 %v1806_v27, %v3396_v57 }
 0x6de   :  { %v1830_v33 = vadd.f32 %v1829_v23, %v1828_v28 }
 0x6e0   :  { %2636 = vtanh.f32 %v1830_v33 }
 0x6e6   :  { %v2637_v47 = vpop.eup %2636 }
 0x6e7   :  { %v1832_v57 = vmul.f32 %v2637_v47, %v1826_v50 }
 0x6e9   :  { %v1834_v53 = vsel %vm1833_vm3, %v1832_v57, %v3401_v0 }
 0x6ea   :  { %v1835_v58 = vpack.c.bf16 %v1834_v53, %v1834_v53 }
 0x6ec   :  { %1912 = vmatmul.bf16.vlgmr.msrb.gmra.mxu2 %v1835_v58 }
 0x76f   :  { %v1913_v13 = vpop.f32.mrf.mxu2 }
 0x770   :  { %v1914_v15 = vadd.f32 %v2508_v7, %v1913_v13 }
 0x772   :  { %v1917_v29 = vmax.f32 %v1914_v15, 0.0 }
 0x774   :  { %v1918_v21 = vpack.c.bf16 %v1917_v29, %v1917_v29 }
 0x776   :  { %1995 = vmatmul.bf16.vlgmr.msrb.gmra.mxu3 %v1918_v21 }
 0x777   :  { %v1915_v30 = vpop.f32.mrf.mxu2 }
 0x7f9   :  { %v1996_v0 = vpop.f32.mrf.mxu3 }
 0x7fa   :  { %v1997_v31 = vadd.f32 %v2509_v42, %v1996_v0 }
 0x7fc   :  { %2000 = vst [vmem:[%s3437_s10] sm:$0xff] %v1997_v31 }
 0x801   :  { %v1998_v38 = vpop.f32.mrf.mxu3 }
 0x802   :  { %2005 = vsyncpa [#allocation4], 1 }
 0x803   :  { %2006 = vsyncpa [#allocation6], 1 }
 0x804   :  { %2007 = vsyncpa [#allocation9], 1 }

</bundles_post_ra>
